<compile_context>
chip_gen: v6e
topology: v6e:2x2x1
jax: 0.10.0
libtpu: 0.0.40
codegen_flags: <defaults>
</compile_context>

<pallas_src>
import functools
import numpy as np
import jax
import jax.numpy as jnp
from jax.experimental import pallas as pl
from jax.experimental.pallas import tpu as pltpu


PARAM_NAMES = ("wqkv", "bqkv", "wo", "bo", "g1", "be1",
               "w1", "c1", "w2", "c2", "g2", "be2")


def pos_sinusoid_embedding(seq_len, d_model):
    """Same formula as the reference pos_sinusoid_embedding (float32)."""
    emb = np.zeros((seq_len, d_model), dtype=np.float32)
    pos = np.arange(seq_len, dtype=np.float32)
    for i in range(d_model):
        arg = pos / np.power(10000.0, 2 * (i // 2) / d_model)
        emb[:, i] = np.sin(arg) if i % 2 == 0 else np.cos(arg)
    return jnp.asarray(emb)


def encoder_kernel(
    x_ref, pos_ref,
    wqkv_ref, bqkv_ref, wo_ref, bo_ref,
    g1_ref, be1_ref,
    w1_ref, c1_ref, w2_ref, c2_ref,
    g2_ref, be2_ref,
    o_ref,
    *, num_layers, num_heads, d_k, d_v, eps=1e-5,
):
    """One batch row (S, D) through pos-emb add + num_layers x EncoderLayer."""
    S, D = x_ref.shape
    H = num_heads
    scale = 1.0 / np.sqrt(d_k)
    bf16, f32 = jnp.bfloat16, jnp.float32

    # ---- positional embedding add (pos_emb(arange(S)) == first S rows of table) ----
    h = x_ref[...] + pos_ref[...]                         # (S, D) f32
    # TODO(synk): dropout layers omitted (eval-mode identity).

    for l in range(num_layers):                           # static unroll, num_layers=2
        # ---- fused Q|K|V projection: one wide bf16 matmul, f32 accumulate ----
        qkv = jnp.dot(h.astype(bf16), wqkv_ref[l],
                      preferred_element_type=f32) + bqkv_ref[l]       # (S, 3*H*d_k)

        # One 2-D transpose puts (q|k|v, head) on leading axes; the reshape below
        # only splits the leading (non-minor) dim, so it is layout-free.
        qkv_t = jnp.transpose(qkv)                                     # (3*H*d_k, S)
        qkv_t = qkv_t.reshape(3 * H, d_k, S).astype(bf16)              # (3H, d_k, S)
        q_t = qkv_t[:H]                                                # (H, d_k, S)
        k_t = qkv_t[H:2 * H]                                           # (H, d_k, S)
        v_t = qkv_t[2 * H:]                                            # (H, d_v, S)

        # ---- attention batched over heads (single head-batch dot_generals) ----
        # TODO(synk): attn_mask / x_lens path omitted (forward is run with mask=None).
        # scores[h, i, j] = sum_d q[h, d, i] * k[h, d, j]
        s = jax.lax.dot_general(q_t, k_t, (((1,), (1,)), ((0,), (0,))),
                                preferred_element_type=f32) * scale    # (H, S, S)
        m = jnp.max(s, axis=-1, keepdims=True)
        e = jnp.exp(s - m)
        den = jnp.sum(e, axis=-1, keepdims=True)
        r = pl.reciprocal(den, approx=True)          # EUP slot (nearly free)
        r = r * (2.0 - den * r)                      # one Newton step -> ~f32 accuracy
        p = (e * r).astype(bf16)                                         # (H, S, S)

        # ctx_t[h, e, i] = sum_j v[h, e, j] * p[h, i, j]
        ctx_t = jax.lax.dot_general(v_t, p, (((2,), (2,)), ((0,), (0,))),
                                    preferred_element_type=f32)          # (H, d_v, S)

        # Heads concatenated along leading axis (layout-free reshape), one 2-D
        # transpose, then ONE fused matmul against the full W_out.
        ctx = jnp.transpose(ctx_t.reshape(H * d_v, S))                   # (S, H*d_v)
        ctx = jnp.dot(ctx.astype(bf16), wo_ref[l],
                      preferred_element_type=f32) + bo_ref[l]            # (S, D)

        # ---- add & LayerNorm 1 (f32) ----
        h1 = h + ctx
        mu1 = jnp.mean(h1, axis=-1, keepdims=True)
        var1 = jnp.mean((h1 - mu1) ** 2, axis=-1, keepdims=True)
        n1 = (h1 - mu1) * jax.lax.rsqrt(var1 + eps) * g1_ref[l] + be1_ref[l]

        # ---- position-wise FFN (Conv1d k=1 == pointwise linear), bf16 matmuls ----
        f = jnp.dot(n1.astype(bf16), w1_ref[l], preferred_element_type=f32) + c1_ref[l]
        f = jnp.maximum(f, 0.0)
        f = jnp.dot(f.astype(bf16), w2_ref[l], preferred_element_type=f32) + c2_ref[l]

        # ---- add & LayerNorm 2 (f32) ----
        h2 = n1 + f
        mu2 = jnp.mean(h2, axis=-1, keepdims=True)
        var2 = jnp.mean((h2 - mu2) ** 2, axis=-1, keepdims=True)
        h = (h2 - mu2) * jax.lax.rsqrt(var2 + eps) * g2_ref[l] + be2_ref[l]

    o_ref[...] = h


def encoder_forward(x, stacked_params, pos_emb_table, *, num_heads):
    """x: (B, S, D) float32. stacked_params: list of (L, ...) arrays in PARAM_NAMES order."""
    B, S, D = x.shape
    num_layers = stacked_params[0].shape[0]
    d_k = d_v = D // num_heads

    kern = functools.partial(
        encoder_kernel, num_layers=num_layers, num_heads=num_heads, d_k=d_k, d_v=d_v)

    vmem_full = pl.BlockSpec(memory_space=pltpu.MemorySpace.VMEM)  # whole array, resident

    # grid=(B,): each grid step processes one batch row; weights/pos table use
    # memory-space-only specs (un-blocked, never re-fetched). "parallel" lets v7x
    # shard the batch axis over its two TensorCores; on v5e/v6e it is a cheap loop.
    # TODO(synk): at these shapes everything fits VMEM trivially; if S/D/L grow past
    # the v7x 64 MiB ceiling, grid over layers + tiled attention would be needed.
    return pl.pallas_call(
        kern,
        grid=(B,),
        out_shape=jax.ShapeDtypeStruct((B, S, D), jnp.float32),
        in_specs=[pl.BlockSpec((None, S, D), lambda b: (b, 0, 0)),   # x: one row per step
                  vmem_full]                                         # pos table
                 + [vmem_full for _ in stacked_params],              # stacked weights
        out_specs=pl.BlockSpec((None, S, D), lambda b: (b, 0, 0)),
        compiler_params=pltpu.CompilerParams(
            dimension_semantics=("parallel",)),
    )(x, pos_emb_table[:S], *stacked_params)


def init_encoder_params(key, num_layers, d_model, num_heads, d_ff):
    """Deterministic synthetic weights matching the module's shapes/init scale,
    stacked over layers. Q|K|V weights pre-concatenated. Matmul weights are stored
    bf16 (MXU-native); biases / LayerNorm params stay f32."""
    d_k = d_v = d_model // num_heads
    f32, bf16 = jnp.float32, jnp.bfloat16
    per = {n: [] for n in PARAM_NAMES}
    for l in range(num_layers):
        lk = jax.random.fold_in(key, l)
        ks = jax.random.split(lk, 8)
        std_qk = np.sqrt(2.0 / (d_model + d_k))
        std_v = np.sqrt(2.0 / (d_model + d_v))
        wq = std_qk * jax.random.normal(ks[0], (d_model, num_heads * d_k), f32)
        wk = std_qk * jax.random.normal(ks[1], (d_model, num_heads * d_k), f32)
        wv = std_v * jax.random.normal(ks[2], (d_model, num_heads * d_v), f32)
        per["wqkv"].append(jnp.concatenate([wq, wk, wv], axis=1).astype(bf16))
        per["bqkv"].append(jnp.zeros((1, num_heads * (2 * d_k + d_v)), f32))
        per["wo"].append((std_v * jax.random.normal(
            ks[3], (num_heads * d_v, d_model), f32)).astype(bf16))
        per["bo"].append(jnp.zeros((1, d_model), f32))
        # LayerNorm params (PyTorch default: gamma=1, beta=0)
        per["g1"].append(jnp.ones((1, d_model), f32))
        per["be1"].append(jnp.zeros((1, d_model), f32))
        per["g2"].append(jnp.ones((1, d_model), f32))
        per["be2"].append(jnp.zeros((1, d_model), f32))
        # PoswiseFFN 1x1-conv weights, stored (in, out)
        per["w1"].append((0.05 * jax.random.normal(ks[4], (d_model, d_ff), f32)).astype(bf16))
        per["c1"].append(0.01 * jax.random.normal(ks[5], (1, d_ff), f32))
        per["w2"].append((0.05 * jax.random.normal(ks[6], (d_ff, d_model), f32)).astype(bf16))
        per["c2"].append(0.01 * jax.random.normal(ks[7], (1, d_model), f32))
    return [jnp.stack(per[n], axis=0) for n in PARAM_NAMES]


if __name__ == "__main__":
    # Shapes consistent with the module: dropout_emb=dropout_posffn=dropout_attn=0,
    # num_layers=2, enc_dim=32, num_heads=4, dff=64, tgt_len=16, batch=2, seq=8.
    B, S, D, H, DFF, NUM_LAYERS, TGT_LEN = 2, 8, 32, 4, 64, 2, 16

    key = jax.random.PRNGKey(0)
    key, xkey = jax.random.split(key)
    x = jax.random.normal(xkey, (B, S, D), dtype=jnp.float32)
    x_lens = jnp.full((B,), S, dtype=jnp.int32)  # unused (mask=None), kept for parity

    pos_emb = pos_sinusoid_embedding(TGT_LEN, D)
    params = init_encoder_params(key, NUM_LAYERS, D, H, DFF)

    fwd = jax.jit(functools.partial(encoder_forward, num_heads=H))
    out = jax.block_until_ready(fwd(x, params, pos_emb))

    assert out.shape == (B, S, D) and out.dtype == jnp.float32
    assert bool(jnp.all(jnp.isfinite(out)))
    print("KERNEL_OK")
</pallas_src>

<mosaic_0001>
module attributes {stable_mosaic.version = 11 : i64} {
  func.func @encoder_kernel(%arg0: i32, %arg1: memref<1x8x32xf32, #tpu.memory_space<vmem>>, %arg2: memref<8x32xf32, #tpu.memory_space<vmem>>, %arg3: memref<2x32x96xbf16, #tpu.memory_space<vmem>>, %arg4: memref<2x1x96xf32, #tpu.memory_space<vmem>>, %arg5: memref<2x32x32xbf16, #tpu.memory_space<vmem>>, %arg6: memref<2x1x32xf32, #tpu.memory_space<vmem>>, %arg7: memref<2x1x32xf32, #tpu.memory_space<vmem>>, %arg8: memref<2x1x32xf32, #tpu.memory_space<vmem>>, %arg9: memref<2x32x64xbf16, #tpu.memory_space<vmem>>, %arg10: memref<2x1x64xf32, #tpu.memory_space<vmem>>, %arg11: memref<2x64x32xbf16, #tpu.memory_space<vmem>>, %arg12: memref<2x1x32xf32, #tpu.memory_space<vmem>>, %arg13: memref<2x1x32xf32, #tpu.memory_space<vmem>>, %arg14: memref<2x1x32xf32, #tpu.memory_space<vmem>>, %arg15: memref<1x8x32xf32, #tpu.memory_space<vmem>>) attributes {dimension_semantics = [#tpu.dimension_semantics<parallel>], iteration_bounds = array<i64: 2>, scalar_prefetch = 0 : i64, scratch_operands = 0 : i64, tpu.core_type = #tpu.core_type<tc>, window_params = [{transform_indices = @transform_0, window_bounds = array<i64: 1, 8, 32>}, {pipeline_mode = #tpu.pipeline_mode<synchronous>, transform_indices = @transform_1, window_bounds = array<i64: 8, 32>}, {pipeline_mode = #tpu.pipeline_mode<synchronous>, transform_indices = @transform_2, window_bounds = array<i64: 2, 32, 96>}, {pipeline_mode = #tpu.pipeline_mode<synchronous>, transform_indices = @transform_3, window_bounds = array<i64: 2, 1, 96>}, {pipeline_mode = #tpu.pipeline_mode<synchronous>, transform_indices = @transform_4, window_bounds = array<i64: 2, 32, 32>}, {pipeline_mode = #tpu.pipeline_mode<synchronous>, transform_indices = @transform_5, window_bounds = array<i64: 2, 1, 32>}, {pipeline_mode = #tpu.pipeline_mode<synchronous>, transform_indices = @transform_6, window_bounds = array<i64: 2, 1, 32>}, {pipeline_mode = #tpu.pipeline_mode<synchronous>, transform_indices = @transform_7, window_bounds = array<i64: 2, 1, 32>}, {pipeline_mode = #tpu.pipeline_mode<synchronous>, transform_indices = @transform_8, window_bounds = array<i64: 2, 32, 64>}, {pipeline_mode = #tpu.pipeline_mode<synchronous>, transform_indices = @transform_9, window_bounds = array<i64: 2, 1, 64>}, {pipeline_mode = #tpu.pipeline_mode<synchronous>, transform_indices = @transform_10, window_bounds = array<i64: 2, 64, 32>}, {pipeline_mode = #tpu.pipeline_mode<synchronous>, transform_indices = @transform_11, window_bounds = array<i64: 2, 1, 32>}, {pipeline_mode = #tpu.pipeline_mode<synchronous>, transform_indices = @transform_12, window_bounds = array<i64: 2, 1, 32>}, {pipeline_mode = #tpu.pipeline_mode<synchronous>, transform_indices = @transform_13, window_bounds = array<i64: 2, 1, 32>}, {transform_indices = @transform_14, window_bounds = array<i64: 1, 8, 32>}]} {
    %c0 = arith.constant 0 : index
    %c0_0 = arith.constant 0 : index
    %c0_1 = arith.constant 0 : index
    %0 = vector.load %arg1[%c0, %c0_0, %c0_1] : memref<1x8x32xf32, #tpu.memory_space<vmem>>, vector<1x8x32xf32>
    %1 = vector.shape_cast %0 : vector<1x8x32xf32> to vector<8x32xf32>
    %c0_2 = arith.constant 0 : index
    %c0_3 = arith.constant 0 : index
    %2 = vector.load %arg2[%c0_2, %c0_3] : memref<8x32xf32, #tpu.memory_space<vmem>>, vector<8x32xf32>
    %3 = arith.addf %1, %2 : vector<8x32xf32>
    %4 = arith.truncf %3 : vector<8x32xf32> to vector<8x32xbf16>
    %c0_4 = arith.constant 0 : index
    %c0_5 = arith.constant 0 : index
    %c0_6 = arith.constant 0 : index
    %5 = vector.load %arg3[%c0_4, %c0_5, %c0_6] : memref<2x32x96xbf16, #tpu.memory_space<vmem>>, vector<1x32x96xbf16>
    %6 = vector.shape_cast %5 : vector<1x32x96xbf16> to vector<32x96xbf16>
    %cst = arith.constant dense<0.000000e+00> : vector<8x96xf32>
    %7 = tpu.matmul %4, %6, %cst {dimension_numbers = #tpu.dot_dimension_numbers<[1], [0], [0], [1], [0, 0, 1, 1], [], []>} : vector<8x32xbf16>, vector<32x96xbf16>, vector<8x96xf32> -> vector<8x96xf32>
    %c0_7 = arith.constant 0 : index
    %c0_8 = arith.constant 0 : index
    %c0_9 = arith.constant 0 : index
    %8 = vector.load %arg4[%c0_7, %c0_8, %c0_9] : memref<2x1x96xf32, #tpu.memory_space<vmem>>, vector<1x1x96xf32>
    %9 = vector.shape_cast %8 : vector<1x1x96xf32> to vector<1x96xf32>
    %10 = vector.broadcast %9 : vector<1x96xf32> to vector<8x96xf32>
    %11 = arith.addf %7, %10 : vector<8x96xf32>
    %12 = tpu.transpose %11, [1, 0] : vector<8x96xf32> -> vector<96x8xf32>
    %13 = vector.shape_cast %12 : vector<96x8xf32> to vector<12x8x8xf32>
    %14 = arith.truncf %13 : vector<12x8x8xf32> to vector<12x8x8xbf16>
    %15 = vector.extract_strided_slice %14 {offsets = [0, 0, 0], sizes = [4, 8, 8], strides = [1, 1, 1]} : vector<12x8x8xbf16> to vector<4x8x8xbf16>
    %16 = vector.extract_strided_slice %14 {offsets = [4, 0, 0], sizes = [4, 8, 8], strides = [1, 1, 1]} : vector<12x8x8xbf16> to vector<4x8x8xbf16>
    %17 = vector.extract_strided_slice %14 {offsets = [8, 0, 0], sizes = [4, 8, 8], strides = [1, 1, 1]} : vector<12x8x8xbf16> to vector<4x8x8xbf16>
    %cst_10 = arith.constant dense<0.000000e+00> : vector<4x8x8xf32>
    %18 = tpu.matmul %15, %16, %cst_10 {dimension_numbers = #tpu.dot_dimension_numbers<[1], [1], [2], [2], [0, 0, 0, 2, 1, 2], [0], [0]>} : vector<4x8x8xbf16>, vector<4x8x8xbf16>, vector<4x8x8xf32> -> vector<4x8x8xf32>
    %cst_11 = arith.constant 0.353553385 : f32
    %19 = vector.broadcast %cst_11 : f32 to vector<4x8x8xf32>
    %20 = arith.mulf %18, %19 : vector<4x8x8xf32>
    %cst_12 = arith.constant dense<0xFF800000> : vector<4x8xf32>
    %21 = vector.multi_reduction <maximumf>, %20, %cst_12 [2] : vector<4x8x8xf32> to vector<4x8xf32>
    %22 = vector.shape_cast %21 : vector<4x8xf32> to vector<4x8x1xf32>
    %23 = vector.broadcast %22 : vector<4x8x1xf32> to vector<4x8x8xf32>
    %24 = arith.subf %20, %23 : vector<4x8x8xf32>
    %25 = math.exp %24 : vector<4x8x8xf32>
    %cst_13 = arith.constant dense<0.000000e+00> : vector<4x8xf32>
    %26 = vector.multi_reduction <add>, %25, %cst_13 [2] : vector<4x8x8xf32> to vector<4x8xf32>
    %27 = vector.shape_cast %26 : vector<4x8xf32> to vector<4x8x1xf32>
    %28 = tpu.reciprocal %27 {approx = true} : vector<4x8x1xf32> -> vector<4x8x1xf32>
    %29 = arith.mulf %27, %28 : vector<4x8x1xf32>
    %cst_14 = arith.constant 2.000000e+00 : f32
    %30 = vector.broadcast %cst_14 : f32 to vector<4x8x1xf32>
    %31 = arith.subf %30, %29 : vector<4x8x1xf32>
    %32 = arith.mulf %28, %31 : vector<4x8x1xf32>
    %33 = vector.broadcast %32 : vector<4x8x1xf32> to vector<4x8x8xf32>
    %34 = arith.mulf %25, %33 : vector<4x8x8xf32>
    %35 = arith.truncf %34 : vector<4x8x8xf32> to vector<4x8x8xbf16>
    %cst_15 = arith.constant dense<0.000000e+00> : vector<4x8x8xf32>
    %36 = tpu.matmul %17, %35, %cst_15 {dimension_numbers = #tpu.dot_dimension_numbers<[2], [2], [1], [1], [0, 0, 0, 1, 1, 1], [0], [0]>} : vector<4x8x8xbf16>, vector<4x8x8xbf16>, vector<4x8x8xf32> -> vector<4x8x8xf32>
    %37 = vector.shape_cast %36 : vector<4x8x8xf32> to vector<32x8xf32>
    %38 = tpu.transpose %37, [1, 0] : vector<32x8xf32> -> vector<8x32xf32>
    %39 = arith.truncf %38 : vector<8x32xf32> to vector<8x32xbf16>
    %c0_16 = arith.constant 0 : index
    %c0_17 = arith.constant 0 : index
    %c0_18 = arith.constant 0 : index
    %40 = vector.load %arg5[%c0_16, %c0_17, %c0_18] : memref<2x32x32xbf16, #tpu.memory_space<vmem>>, vector<1x32x32xbf16>
    %41 = vector.shape_cast %40 : vector<1x32x32xbf16> to vector<32x32xbf16>
    %cst_19 = arith.constant dense<0.000000e+00> : vector<8x32xf32>
    %42 = tpu.matmul %39, %41, %cst_19 {dimension_numbers = #tpu.dot_dimension_numbers<[1], [0], [0], [1], [0, 0, 1, 1], [], []>} : vector<8x32xbf16>, vector<32x32xbf16>, vector<8x32xf32> -> vector<8x32xf32>
    %c0_20 = arith.constant 0 : index
    %c0_21 = arith.constant 0 : index
    %c0_22 = arith.constant 0 : index
    %43 = vector.load %arg6[%c0_20, %c0_21, %c0_22] : memref<2x1x32xf32, #tpu.memory_space<vmem>>, vector<1x1x32xf32>
    %44 = vector.shape_cast %43 : vector<1x1x32xf32> to vector<1x32xf32>
    %45 = vector.broadcast %44 : vector<1x32xf32> to vector<8x32xf32>
    %46 = arith.addf %42, %45 : vector<8x32xf32>
    %47 = arith.addf %3, %46 : vector<8x32xf32>
    %cst_23 = arith.constant dense<0.000000e+00> : vector<8xf32>
    %48 = vector.multi_reduction <add>, %47, %cst_23 [1] : vector<8x32xf32> to vector<8xf32>
    %49 = vector.shape_cast %48 : vector<8xf32> to vector<8x1xf32>
    %cst_24 = arith.constant 3.200000e+01 : f32
    %50 = vector.broadcast %cst_24 : f32 to vector<8x1xf32>
    %51 = arith.divf %49, %50 : vector<8x1xf32>
    %52 = vector.broadcast %51 : vector<8x1xf32> to vector<8x32xf32>
    %53 = arith.subf %47, %52 : vector<8x32xf32>
    %54 = arith.mulf %53, %53 : vector<8x32xf32>
    %cst_25 = arith.constant dense<0.000000e+00> : vector<8xf32>
    %55 = vector.multi_reduction <add>, %54, %cst_25 [1] : vector<8x32xf32> to vector<8xf32>
    %56 = vector.shape_cast %55 : vector<8xf32> to vector<8x1xf32>
    %cst_26 = arith.constant 3.200000e+01 : f32
    %57 = vector.broadcast %cst_26 : f32 to vector<8x1xf32>
    %58 = arith.divf %56, %57 : vector<8x1xf32>
    %59 = vector.broadcast %51 : vector<8x1xf32> to vector<8x32xf32>
    %60 = arith.subf %47, %59 : vector<8x32xf32>
    %cst_27 = arith.constant 9.99999974E-6 : f32
    %61 = vector.broadcast %cst_27 : f32 to vector<8x1xf32>
    %62 = arith.addf %58, %61 : vector<8x1xf32>
    %63 = math.rsqrt %62 : vector<8x1xf32>
    %64 = vector.broadcast %63 : vector<8x1xf32> to vector<8x32xf32>
    %65 = arith.mulf %60, %64 : vector<8x32xf32>
    %c0_28 = arith.constant 0 : index
    %c0_29 = arith.constant 0 : index
    %c0_30 = arith.constant 0 : index
    %66 = vector.load %arg7[%c0_28, %c0_29, %c0_30] : memref<2x1x32xf32, #tpu.memory_space<vmem>>, vector<1x1x32xf32>
    %67 = vector.shape_cast %66 : vector<1x1x32xf32> to vector<1x32xf32>
    %68 = vector.broadcast %67 : vector<1x32xf32> to vector<8x32xf32>
    %69 = arith.mulf %65, %68 : vector<8x32xf32>
    %c0_31 = arith.constant 0 : index
    %c0_32 = arith.constant 0 : index
    %c0_33 = arith.constant 0 : index
    %70 = vector.load %arg8[%c0_31, %c0_32, %c0_33] : memref<2x1x32xf32, #tpu.memory_space<vmem>>, vector<1x1x32xf32>
    %71 = vector.shape_cast %70 : vector<1x1x32xf32> to vector<1x32xf32>
    %72 = vector.broadcast %71 : vector<1x32xf32> to vector<8x32xf32>
    %73 = arith.addf %69, %72 : vector<8x32xf32>
    %74 = arith.truncf %73 : vector<8x32xf32> to vector<8x32xbf16>
    %c0_34 = arith.constant 0 : index
    %c0_35 = arith.constant 0 : index
    %c0_36 = arith.constant 0 : index
    %75 = vector.load %arg9[%c0_34, %c0_35, %c0_36] : memref<2x32x64xbf16, #tpu.memory_space<vmem>>, vector<1x32x64xbf16>
    %76 = vector.shape_cast %75 : vector<1x32x64xbf16> to vector<32x64xbf16>
    %cst_37 = arith.constant dense<0.000000e+00> : vector<8x64xf32>
    %77 = tpu.matmul %74, %76, %cst_37 {dimension_numbers = #tpu.dot_dimension_numbers<[1], [0], [0], [1], [0, 0, 1, 1], [], []>} : vector<8x32xbf16>, vector<32x64xbf16>, vector<8x64xf32> -> vector<8x64xf32>
    %c0_38 = arith.constant 0 : index
    %c0_39 = arith.constant 0 : index
    %c0_40 = arith.constant 0 : index
    %78 = vector.load %arg10[%c0_38, %c0_39, %c0_40] : memref<2x1x64xf32, #tpu.memory_space<vmem>>, vector<1x1x64xf32>
    %79 = vector.shape_cast %78 : vector<1x1x64xf32> to vector<1x64xf32>
    %80 = vector.broadcast %79 : vector<1x64xf32> to vector<8x64xf32>
    %81 = arith.addf %77, %80 : vector<8x64xf32>
    %cst_41 = arith.constant 0.000000e+00 : f32
    %82 = vector.broadcast %cst_41 : f32 to vector<8x64xf32>
    %83 = arith.maximumf %81, %82 : vector<8x64xf32>
    %84 = arith.truncf %83 : vector<8x64xf32> to vector<8x64xbf16>
    %c0_42 = arith.constant 0 : index
    %c0_43 = arith.constant 0 : index
    %c0_44 = arith.constant 0 : index
    %85 = vector.load %arg11[%c0_42, %c0_43, %c0_44] : memref<2x64x32xbf16, #tpu.memory_space<vmem>>, vector<1x64x32xbf16>
    %86 = vector.shape_cast %85 : vector<1x64x32xbf16> to vector<64x32xbf16>
    %cst_45 = arith.constant dense<0.000000e+00> : vector<8x32xf32>
    %87 = tpu.matmul %84, %86, %cst_45 {dimension_numbers = #tpu.dot_dimension_numbers<[1], [0], [0], [1], [0, 0, 1, 1], [], []>} : vector<8x64xbf16>, vector<64x32xbf16>, vector<8x32xf32> -> vector<8x32xf32>
    %c0_46 = arith.constant 0 : index
    %c0_47 = arith.constant 0 : index
    %c0_48 = arith.constant 0 : index
    %88 = vector.load %arg12[%c0_46, %c0_47, %c0_48] : memref<2x1x32xf32, #tpu.memory_space<vmem>>, vector<1x1x32xf32>
    %89 = vector.shape_cast %88 : vector<1x1x32xf32> to vector<1x32xf32>
    %90 = vector.broadcast %89 : vector<1x32xf32> to vector<8x32xf32>
    %91 = arith.addf %87, %90 : vector<8x32xf32>
    %92 = arith.addf %73, %91 : vector<8x32xf32>
    %cst_49 = arith.constant dense<0.000000e+00> : vector<8xf32>
    %93 = vector.multi_reduction <add>, %92, %cst_49 [1] : vector<8x32xf32> to vector<8xf32>
    %94 = vector.shape_cast %93 : vector<8xf32> to vector<8x1xf32>
    %cst_50 = arith.constant 3.200000e+01 : f32
    %95 = vector.broadcast %cst_50 : f32 to vector<8x1xf32>
    %96 = arith.divf %94, %95 : vector<8x1xf32>
    %97 = vector.broadcast %96 : vector<8x1xf32> to vector<8x32xf32>
    %98 = arith.subf %92, %97 : vector<8x32xf32>
    %99 = arith.mulf %98, %98 : vector<8x32xf32>
    %cst_51 = arith.constant dense<0.000000e+00> : vector<8xf32>
    %100 = vector.multi_reduction <add>, %99, %cst_51 [1] : vector<8x32xf32> to vector<8xf32>
    %101 = vector.shape_cast %100 : vector<8xf32> to vector<8x1xf32>
    %cst_52 = arith.constant 3.200000e+01 : f32
    %102 = vector.broadcast %cst_52 : f32 to vector<8x1xf32>
    %103 = arith.divf %101, %102 : vector<8x1xf32>
    %104 = vector.broadcast %96 : vector<8x1xf32> to vector<8x32xf32>
    %105 = arith.subf %92, %104 : vector<8x32xf32>
    %cst_53 = arith.constant 9.99999974E-6 : f32
    %106 = vector.broadcast %cst_53 : f32 to vector<8x1xf32>
    %107 = arith.addf %103, %106 : vector<8x1xf32>
    %108 = math.rsqrt %107 : vector<8x1xf32>
    %109 = vector.broadcast %108 : vector<8x1xf32> to vector<8x32xf32>
    %110 = arith.mulf %105, %109 : vector<8x32xf32>
    %c0_54 = arith.constant 0 : index
    %c0_55 = arith.constant 0 : index
    %c0_56 = arith.constant 0 : index
    %111 = vector.load %arg13[%c0_54, %c0_55, %c0_56] : memref<2x1x32xf32, #tpu.memory_space<vmem>>, vector<1x1x32xf32>
    %112 = vector.shape_cast %111 : vector<1x1x32xf32> to vector<1x32xf32>
    %113 = vector.broadcast %112 : vector<1x32xf32> to vector<8x32xf32>
    %114 = arith.mulf %110, %113 : vector<8x32xf32>
    %c0_57 = arith.constant 0 : index
    %c0_58 = arith.constant 0 : index
    %c0_59 = arith.constant 0 : index
    %115 = vector.load %arg14[%c0_57, %c0_58, %c0_59] : memref<2x1x32xf32, #tpu.memory_space<vmem>>, vector<1x1x32xf32>
    %116 = vector.shape_cast %115 : vector<1x1x32xf32> to vector<1x32xf32>
    %117 = vector.broadcast %116 : vector<1x32xf32> to vector<8x32xf32>
    %118 = arith.addf %114, %117 : vector<8x32xf32>
    %119 = arith.truncf %118 : vector<8x32xf32> to vector<8x32xbf16>
    %c1 = arith.constant 1 : index
    %c0_60 = arith.constant 0 : index
    %c0_61 = arith.constant 0 : index
    %120 = vector.load %arg3[%c1, %c0_60, %c0_61] : memref<2x32x96xbf16, #tpu.memory_space<vmem>>, vector<1x32x96xbf16>
    %121 = vector.shape_cast %120 : vector<1x32x96xbf16> to vector<32x96xbf16>
    %cst_62 = arith.constant dense<0.000000e+00> : vector<8x96xf32>
    %122 = tpu.matmul %119, %121, %cst_62 {dimension_numbers = #tpu.dot_dimension_numbers<[1], [0], [0], [1], [0, 0, 1, 1], [], []>} : vector<8x32xbf16>, vector<32x96xbf16>, vector<8x96xf32> -> vector<8x96xf32>
    %c1_63 = arith.constant 1 : index
    %c0_64 = arith.constant 0 : index
    %c0_65 = arith.constant 0 : index
    %123 = vector.load %arg4[%c1_63, %c0_64, %c0_65] : memref<2x1x96xf32, #tpu.memory_space<vmem>>, vector<1x1x96xf32>
    %124 = vector.shape_cast %123 : vector<1x1x96xf32> to vector<1x96xf32>
    %125 = vector.broadcast %124 : vector<1x96xf32> to vector<8x96xf32>
    %126 = arith.addf %122, %125 : vector<8x96xf32>
    %127 = tpu.transpose %126, [1, 0] : vector<8x96xf32> -> vector<96x8xf32>
    %128 = vector.shape_cast %127 : vector<96x8xf32> to vector<12x8x8xf32>
    %129 = arith.truncf %128 : vector<12x8x8xf32> to vector<12x8x8xbf16>
    %130 = vector.extract_strided_slice %129 {offsets = [0, 0, 0], sizes = [4, 8, 8], strides = [1, 1, 1]} : vector<12x8x8xbf16> to vector<4x8x8xbf16>
    %131 = vector.extract_strided_slice %129 {offsets = [4, 0, 0], sizes = [4, 8, 8], strides = [1, 1, 1]} : vector<12x8x8xbf16> to vector<4x8x8xbf16>
    %132 = vector.extract_strided_slice %129 {offsets = [8, 0, 0], sizes = [4, 8, 8], strides = [1, 1, 1]} : vector<12x8x8xbf16> to vector<4x8x8xbf16>
    %cst_66 = arith.constant dense<0.000000e+00> : vector<4x8x8xf32>
    %133 = tpu.matmul %130, %131, %cst_66 {dimension_numbers = #tpu.dot_dimension_numbers<[1], [1], [2], [2], [0, 0, 0, 2, 1, 2], [0], [0]>} : vector<4x8x8xbf16>, vector<4x8x8xbf16>, vector<4x8x8xf32> -> vector<4x8x8xf32>
    %cst_67 = arith.constant 0.353553385 : f32
    %134 = vector.broadcast %cst_67 : f32 to vector<4x8x8xf32>
    %135 = arith.mulf %133, %134 : vector<4x8x8xf32>
    %cst_68 = arith.constant dense<0xFF800000> : vector<4x8xf32>
    %136 = vector.multi_reduction <maximumf>, %135, %cst_68 [2] : vector<4x8x8xf32> to vector<4x8xf32>
    %137 = vector.shape_cast %136 : vector<4x8xf32> to vector<4x8x1xf32>
    %138 = vector.broadcast %137 : vector<4x8x1xf32> to vector<4x8x8xf32>
    %139 = arith.subf %135, %138 : vector<4x8x8xf32>
    %140 = math.exp %139 : vector<4x8x8xf32>
    %cst_69 = arith.constant dense<0.000000e+00> : vector<4x8xf32>
    %141 = vector.multi_reduction <add>, %140, %cst_69 [2] : vector<4x8x8xf32> to vector<4x8xf32>
    %142 = vector.shape_cast %141 : vector<4x8xf32> to vector<4x8x1xf32>
    %143 = tpu.reciprocal %142 {approx = true} : vector<4x8x1xf32> -> vector<4x8x1xf32>
    %144 = arith.mulf %142, %143 : vector<4x8x1xf32>
    %cst_70 = arith.constant 2.000000e+00 : f32
    %145 = vector.broadcast %cst_70 : f32 to vector<4x8x1xf32>
    %146 = arith.subf %145, %144 : vector<4x8x1xf32>
    %147 = arith.mulf %143, %146 : vector<4x8x1xf32>
    %148 = vector.broadcast %147 : vector<4x8x1xf32> to vector<4x8x8xf32>
    %149 = arith.mulf %140, %148 : vector<4x8x8xf32>
    %150 = arith.truncf %149 : vector<4x8x8xf32> to vector<4x8x8xbf16>
    %cst_71 = arith.constant dense<0.000000e+00> : vector<4x8x8xf32>
    %151 = tpu.matmul %132, %150, %cst_71 {dimension_numbers = #tpu.dot_dimension_numbers<[2], [2], [1], [1], [0, 0, 0, 1, 1, 1], [0], [0]>} : vector<4x8x8xbf16>, vector<4x8x8xbf16>, vector<4x8x8xf32> -> vector<4x8x8xf32>
    %152 = vector.shape_cast %151 : vector<4x8x8xf32> to vector<32x8xf32>
    %153 = tpu.transpose %152, [1, 0] : vector<32x8xf32> -> vector<8x32xf32>
    %154 = arith.truncf %153 : vector<8x32xf32> to vector<8x32xbf16>
    %c1_72 = arith.constant 1 : index
    %c0_73 = arith.constant 0 : index
    %c0_74 = arith.constant 0 : index
    %155 = vector.load %arg5[%c1_72, %c0_73, %c0_74] : memref<2x32x32xbf16, #tpu.memory_space<vmem>>, vector<1x32x32xbf16>
    %156 = vector.shape_cast %155 : vector<1x32x32xbf16> to vector<32x32xbf16>
    %cst_75 = arith.constant dense<0.000000e+00> : vector<8x32xf32>
    %157 = tpu.matmul %154, %156, %cst_75 {dimension_numbers = #tpu.dot_dimension_numbers<[1], [0], [0], [1], [0, 0, 1, 1], [], []>} : vector<8x32xbf16>, vector<32x32xbf16>, vector<8x32xf32> -> vector<8x32xf32>
    %c1_76 = arith.constant 1 : index
    %c0_77 = arith.constant 0 : index
    %c0_78 = arith.constant 0 : index
    %158 = vector.load %arg6[%c1_76, %c0_77, %c0_78] : memref<2x1x32xf32, #tpu.memory_space<vmem>>, vector<1x1x32xf32>
    %159 = vector.shape_cast %158 : vector<1x1x32xf32> to vector<1x32xf32>
    %160 = vector.broadcast %159 : vector<1x32xf32> to vector<8x32xf32>
    %161 = arith.addf %157, %160 : vector<8x32xf32>
    %162 = arith.addf %118, %161 : vector<8x32xf32>
    %cst_79 = arith.constant dense<0.000000e+00> : vector<8xf32>
    %163 = vector.multi_reduction <add>, %162, %cst_79 [1] : vector<8x32xf32> to vector<8xf32>
    %164 = vector.shape_cast %163 : vector<8xf32> to vector<8x1xf32>
    %cst_80 = arith.constant 3.200000e+01 : f32
    %165 = vector.broadcast %cst_80 : f32 to vector<8x1xf32>
    %166 = arith.divf %164, %165 : vector<8x1xf32>
    %167 = vector.broadcast %166 : vector<8x1xf32> to vector<8x32xf32>
    %168 = arith.subf %162, %167 : vector<8x32xf32>
    %169 = arith.mulf %168, %168 : vector<8x32xf32>
    %cst_81 = arith.constant dense<0.000000e+00> : vector<8xf32>
    %170 = vector.multi_reduction <add>, %169, %cst_81 [1] : vector<8x32xf32> to vector<8xf32>
    %171 = vector.shape_cast %170 : vector<8xf32> to vector<8x1xf32>
    %cst_82 = arith.constant 3.200000e+01 : f32
    %172 = vector.broadcast %cst_82 : f32 to vector<8x1xf32>
    %173 = arith.divf %171, %172 : vector<8x1xf32>
    %174 = vector.broadcast %166 : vector<8x1xf32> to vector<8x32xf32>
    %175 = arith.subf %162, %174 : vector<8x32xf32>
    %cst_83 = arith.constant 9.99999974E-6 : f32
    %176 = vector.broadcast %cst_83 : f32 to vector<8x1xf32>
    %177 = arith.addf %173, %176 : vector<8x1xf32>
    %178 = math.rsqrt %177 : vector<8x1xf32>
    %179 = vector.broadcast %178 : vector<8x1xf32> to vector<8x32xf32>
    %180 = arith.mulf %175, %179 : vector<8x32xf32>
    %c1_84 = arith.constant 1 : index
    %c0_85 = arith.constant 0 : index
    %c0_86 = arith.constant 0 : index
    %181 = vector.load %arg7[%c1_84, %c0_85, %c0_86] : memref<2x1x32xf32, #tpu.memory_space<vmem>>, vector<1x1x32xf32>
    %182 = vector.shape_cast %181 : vector<1x1x32xf32> to vector<1x32xf32>
    %183 = vector.broadcast %182 : vector<1x32xf32> to vector<8x32xf32>
    %184 = arith.mulf %180, %183 : vector<8x32xf32>
    %c1_87 = arith.constant 1 : index
    %c0_88 = arith.constant 0 : index
    %c0_89 = arith.constant 0 : index
    %185 = vector.load %arg8[%c1_87, %c0_88, %c0_89] : memref<2x1x32xf32, #tpu.memory_space<vmem>>, vector<1x1x32xf32>
    %186 = vector.shape_cast %185 : vector<1x1x32xf32> to vector<1x32xf32>
    %187 = vector.broadcast %186 : vector<1x32xf32> to vector<8x32xf32>
    %188 = arith.addf %184, %187 : vector<8x32xf32>
    %189 = arith.truncf %188 : vector<8x32xf32> to vector<8x32xbf16>
    %c1_90 = arith.constant 1 : index
    %c0_91 = arith.constant 0 : index
    %c0_92 = arith.constant 0 : index
    %190 = vector.load %arg9[%c1_90, %c0_91, %c0_92] : memref<2x32x64xbf16, #tpu.memory_space<vmem>>, vector<1x32x64xbf16>
    %191 = vector.shape_cast %190 : vector<1x32x64xbf16> to vector<32x64xbf16>
    %cst_93 = arith.constant dense<0.000000e+00> : vector<8x64xf32>
    %192 = tpu.matmul %189, %191, %cst_93 {dimension_numbers = #tpu.dot_dimension_numbers<[1], [0], [0], [1], [0, 0, 1, 1], [], []>} : vector<8x32xbf16>, vector<32x64xbf16>, vector<8x64xf32> -> vector<8x64xf32>
    %c1_94 = arith.constant 1 : index
    %c0_95 = arith.constant 0 : index
    %c0_96 = arith.constant 0 : index
    %193 = vector.load %arg10[%c1_94, %c0_95, %c0_96] : memref<2x1x64xf32, #tpu.memory_space<vmem>>, vector<1x1x64xf32>
    %194 = vector.shape_cast %193 : vector<1x1x64xf32> to vector<1x64xf32>
    %195 = vector.broadcast %194 : vector<1x64xf32> to vector<8x64xf32>
    %196 = arith.addf %192, %195 : vector<8x64xf32>
    %cst_97 = arith.constant 0.000000e+00 : f32
    %197 = vector.broadcast %cst_97 : f32 to vector<8x64xf32>
    %198 = arith.maximumf %196, %197 : vector<8x64xf32>
    %199 = arith.truncf %198 : vector<8x64xf32> to vector<8x64xbf16>
    %c1_98 = arith.constant 1 : index
    %c0_99 = arith.constant 0 : index
    %c0_100 = arith.constant 0 : index
    %200 = vector.load %arg11[%c1_98, %c0_99, %c0_100] : memref<2x64x32xbf16, #tpu.memory_space<vmem>>, vector<1x64x32xbf16>
    %201 = vector.shape_cast %200 : vector<1x64x32xbf16> to vector<64x32xbf16>
    %cst_101 = arith.constant dense<0.000000e+00> : vector<8x32xf32>
    %202 = tpu.matmul %199, %201, %cst_101 {dimension_numbers = #tpu.dot_dimension_numbers<[1], [0], [0], [1], [0, 0, 1, 1], [], []>} : vector<8x64xbf16>, vector<64x32xbf16>, vector<8x32xf32> -> vector<8x32xf32>
    %c1_102 = arith.constant 1 : index
    %c0_103 = arith.constant 0 : index
    %c0_104 = arith.constant 0 : index
    %203 = vector.load %arg12[%c1_102, %c0_103, %c0_104] : memref<2x1x32xf32, #tpu.memory_space<vmem>>, vector<1x1x32xf32>
    %204 = vector.shape_cast %203 : vector<1x1x32xf32> to vector<1x32xf32>
    %205 = vector.broadcast %204 : vector<1x32xf32> to vector<8x32xf32>
    %206 = arith.addf %202, %205 : vector<8x32xf32>
    %207 = arith.addf %188, %206 : vector<8x32xf32>
    %cst_105 = arith.constant dense<0.000000e+00> : vector<8xf32>
    %208 = vector.multi_reduction <add>, %207, %cst_105 [1] : vector<8x32xf32> to vector<8xf32>
    %209 = vector.shape_cast %208 : vector<8xf32> to vector<8x1xf32>
    %cst_106 = arith.constant 3.200000e+01 : f32
    %210 = vector.broadcast %cst_106 : f32 to vector<8x1xf32>
    %211 = arith.divf %209, %210 : vector<8x1xf32>
    %212 = vector.broadcast %211 : vector<8x1xf32> to vector<8x32xf32>
    %213 = arith.subf %207, %212 : vector<8x32xf32>
    %214 = arith.mulf %213, %213 : vector<8x32xf32>
    %cst_107 = arith.constant dense<0.000000e+00> : vector<8xf32>
    %215 = vector.multi_reduction <add>, %214, %cst_107 [1] : vector<8x32xf32> to vector<8xf32>
    %216 = vector.shape_cast %215 : vector<8xf32> to vector<8x1xf32>
    %cst_108 = arith.constant 3.200000e+01 : f32
    %217 = vector.broadcast %cst_108 : f32 to vector<8x1xf32>
    %218 = arith.divf %216, %217 : vector<8x1xf32>
    %219 = vector.broadcast %211 : vector<8x1xf32> to vector<8x32xf32>
    %220 = arith.subf %207, %219 : vector<8x32xf32>
    %cst_109 = arith.constant 9.99999974E-6 : f32
    %221 = vector.broadcast %cst_109 : f32 to vector<8x1xf32>
    %222 = arith.addf %218, %221 : vector<8x1xf32>
    %223 = math.rsqrt %222 : vector<8x1xf32>
    %224 = vector.broadcast %223 : vector<8x1xf32> to vector<8x32xf32>
    %225 = arith.mulf %220, %224 : vector<8x32xf32>
    %c1_110 = arith.constant 1 : index
    %c0_111 = arith.constant 0 : index
    %c0_112 = arith.constant 0 : index
    %226 = vector.load %arg13[%c1_110, %c0_111, %c0_112] : memref<2x1x32xf32, #tpu.memory_space<vmem>>, vector<1x1x32xf32>
    %227 = vector.shape_cast %226 : vector<1x1x32xf32> to vector<1x32xf32>
    %228 = vector.broadcast %227 : vector<1x32xf32> to vector<8x32xf32>
    %229 = arith.mulf %225, %228 : vector<8x32xf32>
    %c1_113 = arith.constant 1 : index
    %c0_114 = arith.constant 0 : index
    %c0_115 = arith.constant 0 : index
    %230 = vector.load %arg14[%c1_113, %c0_114, %c0_115] : memref<2x1x32xf32, #tpu.memory_space<vmem>>, vector<1x1x32xf32>
    %231 = vector.shape_cast %230 : vector<1x1x32xf32> to vector<1x32xf32>
    %232 = vector.broadcast %231 : vector<1x32xf32> to vector<8x32xf32>
    %233 = arith.addf %229, %232 : vector<8x32xf32>
    %c0_116 = arith.constant 0 : index
    %c0_117 = arith.constant 0 : index
    %c0_118 = arith.constant 0 : index
    %234 = vector.load %arg15[%c0_116, %c0_117, %c0_118] : memref<1x8x32xf32, #tpu.memory_space<vmem>>, vector<1x8x32xf32>
    %235 = vector.shape_cast %234 : vector<1x8x32xf32> to vector<8x32xf32>
    %236 = vector.shape_cast %233 : vector<8x32xf32> to vector<1x8x32xf32>
    tpu.vector_store %arg15[%c0_116, %c0_117, %c0_118], %236 {strides = array<i32>} : memref<1x8x32xf32, #tpu.memory_space<vmem>>, vector<1x8x32xf32>,
    return
  }
  func.func @transform_0(%arg0: i32) -> (i32, i32, i32) {
    %c0_i32 = arith.constant 0 : i32
    %c0_i32_0 = arith.constant 0 : i32
    %c0_i32_1 = arith.constant 0 : i32
    return %arg0, %c0_i32, %c0_i32_0 : i32, i32, i32
  }
  func.func @transform_1(%arg0: i32) -> (i32, i32) {
    %c0_i32 = arith.constant 0 : i32
    %c0_i32_0 = arith.constant 0 : i32
    %c0_i32_1 = arith.constant 0 : i32
    return %c0_i32, %c0_i32_0 : i32, i32
  }
  func.func @transform_2(%arg0: i32) -> (i32, i32, i32) {
    %c0_i32 = arith.constant 0 : i32
    %c0_i32_0 = arith.constant 0 : i32
    %c0_i32_1 = arith.constant 0 : i32
    %c0_i32_2 = arith.constant 0 : i32
    return %c0_i32, %c0_i32_0, %c0_i32_1 : i32, i32, i32
  }
  func.func @transform_3(%arg0: i32) -> (i32, i32, i32) {
    %c0_i32 = arith.constant 0 : i32
    %c0_i32_0 = arith.constant 0 : i32
    %c0_i32_1 = arith.constant 0 : i32
    %c0_i32_2 = arith.constant 0 : i32
    return %c0_i32, %c0_i32_0, %c0_i32_1 : i32, i32, i32
  }
  func.func @transform_4(%arg0: i32) -> (i32, i32, i32) {
    %c0_i32 = arith.constant 0 : i32
    %c0_i32_0 = arith.constant 0 : i32
    %c0_i32_1 = arith.constant 0 : i32
    %c0_i32_2 = arith.constant 0 : i32
    return %c0_i32, %c0_i32_0, %c0_i32_1 : i32, i32, i32
  }
  func.func @transform_5(%arg0: i32) -> (i32, i32, i32) {
    %c0_i32 = arith.constant 0 : i32
    %c0_i32_0 = arith.constant 0 : i32
    %c0_i32_1 = arith.constant 0 : i32
    %c0_i32_2 = arith.constant 0 : i32
    return %c0_i32, %c0_i32_0, %c0_i32_1 : i32, i32, i32
  }
  func.func @transform_6(%arg0: i32) -> (i32, i32, i32) {
    %c0_i32 = arith.constant 0 : i32
    %c0_i32_0 = arith.constant 0 : i32
    %c0_i32_1 = arith.constant 0 : i32
    %c0_i32_2 = arith.constant 0 : i32
    return %c0_i32, %c0_i32_0, %c0_i32_1 : i32, i32, i32
  }
  func.func @transform_7(%arg0: i32) -> (i32, i32, i32) {
    %c0_i32 = arith.constant 0 : i32
    %c0_i32_0 = arith.constant 0 : i32
    %c0_i32_1 = arith.constant 0 : i32
    %c0_i32_2 = arith.constant 0 : i32
    return %c0_i32, %c0_i32_0, %c0_i32_1 : i32, i32, i32
  }
  func.func @transform_8(%arg0: i32) -> (i32, i32, i32) {
    %c0_i32 = arith.constant 0 : i32
    %c0_i32_0 = arith.constant 0 : i32
    %c0_i32_1 = arith.constant 0 : i32
    %c0_i32_2 = arith.constant 0 : i32
    return %c0_i32, %c0_i32_0, %c0_i32_1 : i32, i32, i32
  }
  func.func @transform_9(%arg0: i32) -> (i32, i32, i32) {
    %c0_i32 = arith.constant 0 : i32
    %c0_i32_0 = arith.constant 0 : i32
    %c0_i32_1 = arith.constant 0 : i32
    %c0_i32_2 = arith.constant 0 : i32
    return %c0_i32, %c0_i32_0, %c0_i32_1 : i32, i32, i32
  }
  func.func @transform_10(%arg0: i32) -> (i32, i32, i32) {
    %c0_i32 = arith.constant 0 : i32
    %c0_i32_0 = arith.constant 0 : i32
    %c0_i32_1 = arith.constant 0 : i32
    %c0_i32_2 = arith.constant 0 : i32
    return %c0_i32, %c0_i32_0, %c0_i32_1 : i32, i32, i32
  }
  func.func @transform_11(%arg0: i32) -> (i32, i32, i32) {
    %c0_i32 = arith.constant 0 : i32
    %c0_i32_0 = arith.constant 0 : i32
    %c0_i32_1 = arith.constant 0 : i32
    %c0_i32_2 = arith.constant 0 : i32
    return %c0_i32, %c0_i32_0, %c0_i32_1 : i32, i32, i32
  }
  func.func @transform_12(%arg0: i32) -> (i32, i32, i32) {
    %c0_i32 = arith.constant 0 : i32
    %c0_i32_0 = arith.constant 0 : i32
    %c0_i32_1 = arith.constant 0 : i32
    %c0_i32_2 = arith.constant 0 : i32
    return %c0_i32, %c0_i32_0, %c0_i32_1 : i32, i32, i32
  }
  func.func @transform_13(%arg0: i32) -> (i32, i32, i32) {
    %c0_i32 = arith.constant 0 : i32
    %c0_i32_0 = arith.constant 0 : i32
    %c0_i32_1 = arith.constant 0 : i32
    %c0_i32_2 = arith.constant 0 : i32
    return %c0_i32, %c0_i32_0, %c0_i32_1 : i32, i32, i32
  }
  func.func @transform_14(%arg0: i32) -> (i32, i32, i32) {
    %c0_i32 = arith.constant 0 : i32
    %c0_i32_0 = arith.constant 0 : i32
    %c0_i32_1 = arith.constant 0 : i32
    return %arg0, %c0_i32, %c0_i32_0 : i32, i32, i32
  }
}

</mosaic_0001>

<bundles_post_ra>
// kernel: encoder_forward.1
= control target key start
LH: loop header
LB: loop body
LE: loop exit
PB: predicated region body
PF: predicated region fallthrough
CT: control target
= control target key end

     0   :  { %s3931_s0 = inlined_call_operand.hbm [shape: f32[2,8,32], index: 0, kind: input, shape index: {}]   ;;  %s3932_s1 = inlined_call_operand.vmem [shape: f32[8,32], index: 1, kind: input, shape index: {}]   ;;  %s3933_s2 = inlined_call_operand.vmem [shape: bf16[2,32,96], index: 2, kind: input, shape index: {}]   ;;  %s3934_s3 = inlined_call_operand.hbm [shape: f32[2,1,96], index: 3, kind: input, shape index: {}]   ;;  %s3935_s4 = inlined_call_operand.vmem [shape: bf16[2,32,32], index: 4, kind: input, shape index: {}]   ;;  %s3936_s5 = inlined_call_operand.hbm [shape: f32[2,1,32], index: 5, kind: input, shape index: {}]   ;;  %s3937_s6 = inlined_call_operand.hbm [shape: f32[2,1,32], index: 6, kind: input, shape index: {}]   ;;  %s3938_s7 = inlined_call_operand.hbm [shape: f32[2,1,32], index: 7, kind: input, shape index: {}]   ;;  %s3939_s8 = inlined_call_operand.vmem [shape: bf16[2,32,64], index: 8, kind: input, shape index: {}]   ;;  %s3940_s9 = inlined_call_operand.hbm [shape: f32[2,1,64], index: 9, kind: input, shape index: {}]   ;;  %s3941_s10 = inlined_call_operand.vmem [shape: bf16[2,64,32], index: 10, kind: input, shape index: {}]   ;;  %s3942_s11 = inlined_call_operand.vmem [shape: f32[2,1,32], index: 11, kind: input, shape index: {}]   ;;  %s3943_s12 = inlined_call_operand.vmem [shape: f32[2,1,32], index: 12, kind: input, shape index: {}]   ;;  %s3944_s13 = inlined_call_operand.hbm [shape: f32[2,1,32], index: 13, kind: input, shape index: {}]   ;;  %s3945_s14 = inlined_call_operand.hbm [shape: f32[2,8,32], index: 14, kind: output, shape index: {}]  }
   0x1   :  { %3952 = sst [smem:[#allocation22_spill]] %s3934_s3 }
   0x2   :  { %3953 = sst [smem:[#allocation23_spill]] %s3936_s5 }
   0x3   :  { %3954 = sst [smem:[#allocation24_spill]] %s3937_s6 }
   0x4   :  { %3955 = sst [smem:[#allocation25_spill]] %s3938_s7 }
   0x5   :  { %3956 = sst [smem:[#allocation26_spill]] %s3940_s9 }
   0x6   :  { %3957 = sst [smem:[#allocation27_spill]] %s3944_s13 }
   0x7   :  { %3958 = sst [smem:[#allocation28_spill]] %s3945_s14 }
   0x8   :  { %19 = vsyncpa [#allocation3], 0 }
   0x9   :  { %21 = vsyncpa [#allocation3 + $0x1], 0 }
   0xa   :  { %22 = vsyncpa [#allocation6], 0 }
   0xb   :  { %23 = vsyncpa [#allocation9], 0 }
   0xc   :  { %24 = vsyncpa [#allocation12], 0 }
   0xd   :  { %25 = vsyncpa [#allocation4], 0 }
   0xe   :  { %27 = vsyncpa [#allocation4 + $0x1], 0  ;;  %s3422_s29 = smov 0   ;;  %s3424_s30 = smov 0  }
   0xf   :  { %s3426_s15 = smov 0   ;;  %s3428_s16 = smov 0  }
  0x10 LB: > { %3959 = sst [smem:[#allocation20_spill]] %s3329_s15  ;;  %s3335_s17 = smov [#allocation5]   ;;  %s3333_s16 = sphi %s3428_s16, %s3993_s16   ;;  %s3329_s15 = sphi %s3426_s15, %s3992_s15   ;;  %s3325_s30 = sphi %s3424_s30, %s3991_s30   ;;  %s3321_s29 = sphi %s3422_s29, %s3990_s29  }
  0x11   : > { %s381_s18 = sshll.u32 %s3335_s17, 4  ;;  %s3443_s19 = sadd.s32 4294967295, %s3333_s16   ;;  %s382_s18 = int_to_ptr.vmem [resolvable:$true] %s381_s18 }
  0x12   : > { %p2568_p0 = scmp.ge.s32.totalorder %s3333_s16, 1  ;;  %p3947_p1 = scmp.eq.s32.totalorder %s3443_s19, 0 }
  0x13   : > { %p363_p2 = scmp.lt.s32.totalorder %s3333_s16, 3  ;;  %s3336_s21 = smov [#allocation8]  }
  0x14   : > { %s410_s22 = sshll.u32 %s3336_s21, 4  ;;  %s3337_s24 = smov [#allocation11]   ;;  %s3461_s22 = int_to_ptr.vmem [resolvable:$true] %s410_s22 }
  0x15   : > { %p3448_p3 = pnand %p2568_p0, %p363_p2  ;;  %s439_s25 = sshll.u32 %s3337_s24, 4  ;;  %s3463_s25 = int_to_ptr.vmem [resolvable:$true] %s439_s25 }
  0x16   : > { %s3084_s27 = scalar_lea.vmem %s382_s18, 32  ;;  %p3092_p11 = scmp.lt.s32.totalorder %s382_s18, %s382_s18 }
  0x17   : > { %s3960_s20 = scalar_select %p3448_p3, 1, 0 }
  0x18   : > { %p2929_p5 = pneg %p3448_p3  ;;  %p3085_p8 = scmp.ne.s32.totalorder %s382_s18, %s3084_s27 }
  0x19   : > { %p3093_p12 = scmp.lt.s32.totalorder %s3084_s27, %s3084_s27 }
  0x1a   : > { %p3457_p6 = pnand %p2929_p5, %p3947_p1 }
  0x1b   : > { %p3094_p13 = por %p3093_p12, %p3092_p11 }
  0x1c   : > { %p3467_p7 = pneg %p3457_p6 }
  0x1e   : > { %p3087_p9 = pnand %p3085_p8, %p3467_p7 }
  0x20   : > { %p3088_p10 = pneg %p3087_p9 }
  0x22   : > { %p3095_p0 = pnand %p3094_p13, %p3088_p10 }
  0x24   : > { %3098 = shalt.err (!%p3095_p0)
}
  0x25   : > { %s3338_s28 = smov 16   ;;  %s3339_s17 = smov 1  }
  0x26   : > { %s3963_s3 = sld [smem:[#allocation22_spill]]  ;;  %s3110_s14 = scalar_lea.vmem %s3461_s22, 32 }
  0x27   : > { %p3111_p2 = scmp.ne.s32.totalorder %s3461_s22, %s3110_s14  ;;  %p3118_p9 = scmp.lt.s32.totalorder %s3461_s22, %s3461_s22 }
  0x28   : > { %p3119_p10 = scmp.lt.s32.totalorder %s3110_s14, %s3110_s14 }
  0x29   : > { %p3113_p5 = pnand %p3111_p2, %p3467_p7 }
  0x2a   : > { %p3120_p11 = por %p3119_p10, %p3118_p9 }
  0x2b   : > { %p3114_p8 = pneg %p3113_p5 }
  0x2c   : > { %2932 = dma.hbm_to_vmem [thread:$0]  (!%p3457_p6), %s3963_s3, 32, %s382_s18, [#allocation6], %s3338_s28, %s3338_s28, %s3339_s17  }
  0x2d   : > { %p3121_p12 = pnand %p3120_p11, %p3114_p8 }
  0x2f   : > { %3124 = shalt.err (!%p3121_p12)
}
  0x30   : > { %s3964_s6 = sld [smem:[#allocation24_spill]]  ;;  %s3136_s18 = scalar_lea.vmem %s3463_s25, 32 }
  0x31   : > { %p3137_p13 = scmp.ne.s32.totalorder %s3463_s25, %s3136_s18  ;;  %p3144_p5 = scmp.lt.s32.totalorder %s3463_s25, %s3463_s25 }
  0x32   : > { %p3145_p8 = scmp.lt.s32.totalorder %s3136_s18, %s3136_s18 }
  0x33   : > { %p3139_p0 = pnand %p3137_p13, %p3467_p7 }
  0x34   : > { %p3146_p9 = por %p3145_p8, %p3144_p5 }
  0x35   : > { %p3140_p2 = pneg %p3139_p0 }
  0x36   : > { %2938 = dma.hbm_to_vmem [thread:$0]  (!%p3457_p6), %s3964_s6, 32, %s3461_s22, [#allocation9], %s3338_s28, %s3338_s28, %s3339_s17  }
  0x37   : > { %p3147_p10 = pnand %p3146_p9, %p3140_p2 }
  0x39   : > { %3150 = shalt.err (!%p3147_p10)
}
  0x3a   : > { %s3965_s9 = sld [smem:[#allocation26_spill]]  ;;  %s3340_s22 = smov [#allocation7]  }
  0x3b   : > { %s397_s27 = sshll.u32 %s3340_s22, 4  ;;  %s3341_s21 = smov [#allocation10]   ;;  %s398_s27 = int_to_ptr.vmem [resolvable:$true] %s397_s27 }
  0x3c   : > { %s423_s3 = sshll.u32 %s3341_s21, 4  ;;  %s3162_s18 = scalar_lea.vmem %s398_s27, 32  ;;  %s424_s3 = int_to_ptr.vmem [resolvable:$true] %s423_s3 }
  0x3d   : > { %p3163_p11 = scmp.ne.s32.totalorder %s398_s27, %s3162_s18  ;;  %p3170_p0 = scmp.lt.s32.totalorder %s398_s27, %s398_s27 }
  0x3e   : > { %p3171_p2 = scmp.lt.s32.totalorder %s3162_s18, %s3162_s18 }
  0x3f   : > { %p3165_p12 = pnand %p3163_p11, %p3467_p7 }
  0x40   : > { %2944 = dma.hbm_to_vmem [thread:$0]  (!%p3457_p6), %s3965_s9, 32, %s3463_s25, [#allocation12], %s3338_s28, %s3338_s28, %s3339_s17  }
  0x41   : > { %p3166_p13 = pneg %p3165_p12  ;;  %p3172_p5 = por %p3171_p2, %p3170_p0 }
  0x43   : > { %p3173_p8 = pnand %p3172_p5, %p3166_p13 }
  0x45   : > { %3176 = shalt.err (!%p3173_p8)
}
  0x46   : > { %s3966_s5 = sld [smem:[#allocation23_spill]]  ;;  %s3188_s24 = scalar_lea.vmem %s424_s3, 32 }
  0x47   : > { %p3189_p9 = scmp.ne.s32.totalorder %s424_s3, %s3188_s24  ;;  %p3196_p12 = scmp.lt.s32.totalorder %s424_s3, %s424_s3 }
  0x48   : > { %p3197_p0 = scmp.lt.s32.totalorder %s3188_s24, %s3188_s24 }
  0x49   : > { %p3191_p10 = pnand %p3189_p9, %p3467_p7 }
  0x4a   : > { %p3198_p13 = por %p3197_p0, %p3196_p12 }
  0x4b   : > { %p3192_p11 = pneg %p3191_p10 }
  0x4c   : > { %2935 = dma.hbm_to_vmem [thread:$0]  (!%p3457_p6), %s3966_s5, 32, %s398_s27, [#allocation6], %s3338_s28, %s3338_s28, %s3339_s17  }
  0x4d   : > { %p3199_p2 = pnand %p3198_p13, %p3192_p11 }
  0x4f   : > { %3202 = shalt.err (!%p3199_p2)
}
  0x50   : > { %s3967_s7 = sld [smem:[#allocation25_spill]]  ;;  %s3342_s27 = smov [#allocation13]  }
  0x51   : > { %s461_s18 = sshll.u32 %s3342_s27, 4  ;;  %s462_s18 = int_to_ptr.vmem [resolvable:$true] %s461_s18 }
  0x52   : > { %s3214_s25 = scalar_lea.vmem %s462_s18, 32  ;;  %p3222_p10 = scmp.lt.s32.totalorder %s462_s18, %s462_s18 }
  0x53   : > { %p3215_p5 = scmp.ne.s32.totalorder %s462_s18, %s3214_s25  ;;  %p3223_p11 = scmp.lt.s32.totalorder %s3214_s25, %s3214_s25 }
  0x55   : > { %p3217_p8 = pnand %p3215_p5, %p3467_p7  ;;  %p3224_p12 = por %p3223_p11, %p3222_p10 }
  0x56   : > { %2941 = dma.hbm_to_vmem [thread:$0]  (!%p3457_p6), %s3967_s7, 32, %s424_s3, [#allocation9], %s3338_s28, %s3338_s28, %s3339_s17  }
  0x57   : > { %p3218_p9 = pneg %p3217_p8 }
  0x59   : > { %p3225_p0 = pnand %p3224_p12, %p3218_p9 }
  0x5b   : > { %3228 = shalt.err (!%p3225_p0)
}
  0x5c   : > { %s3968_s13 = sld [smem:[#allocation27_spill]]  ;;  %s2567_s23 = sadd.s32 4294967294, %s3333_s16  }
  0x5d   : > { %s3543_s26 = sadd.s32 1, %s3333_s16   ;;  %s40_s22 = sadd.s32 1, %s3329_s15 }
  0x5e   : > { %s37_s24 = ssub.s32 %s3333_s16, %s3543_s26  ;;  %p47_p13 = scmp.ne.s32.totalorder %s3329_s15, %s3325_s30 }
  0x5f   : > { %p38_p7 = scmp.eq.s32.totalorder %s37_s24, 0  ;;  %p48_p2 = scmp.eq.s32.totalorder %s3333_s16, 0 }
  0x60   : > { %p53_p5 = scmp.ne.s32.totalorder %s3325_s30, %s3321_s29  ;;  %p350_p9 = scmp.eq.s32.totalorder %s3443_s19, 1 }
  0x61   : > { %s3554_s21 = scalar_select %p38_p7, %s3329_s15, %s40_s22  }
  0x62   : > { %2947 = dma.hbm_to_vmem [thread:$0]  (!%p3457_p6), %s3968_s13, 32, %s462_s18, [#allocation12], %s3338_s28, %s3338_s28, %s3339_s17  }
  0x63   : > { %3969 = sst [smem:[#allocation21_spill]] %s3554_s21  ;;  %p3556_p8 = por %p48_p2, %p47_p13 }
  0x64   : > { %p3562_p6 = por %p3947_p1, %p53_p5  ;;  %p356_p10 = scmp.eq.s32.totalorder %s2567_s23, 1 }
  0x65   : > { %p2962_p11 = scmp.lt.s32.totalorder %s3333_s16, 2  ;;  %s475_s17 = sand.u32 1, %s3329_s15  }
  0x66   : > { %s3971_s28 = scalar_select %p3562_p6, 1, 0 }
  0x67   : > { %p3569_p12 = por %p350_p9, %p47_p13  ;;  %p3573_p0 = por %p356_p10, %p53_p5 }
  0x68   : > { %s2576_s14 = sshll.u32 %s475_s17, 3  ;;  %s2577_s3 = sshll.u32 %s3333_s16, 7 }
  0x69   : > { %s3972_s18 = scalar_select %p3569_p12, 1, 0 }
  0x6a   : > { %s3973_s25 = scalar_select %p3573_p0, 1, 0 }
  0x6b   : > { %s3581_s5 = scalar_lea.hbm %s3931_s0, %s2577_s3  ;;  %s479_s23 = scalar_lea.vmem [#allocation2], %s2576_s14 }
  0x6c   : > { %s486_s6 = sshll.u32 %s479_s23, 4  ;;  %p3585_p7 = pnand %p2962_p11, %p3556_p8  ;;  %s487_s6 = int_to_ptr.vmem [resolvable:$true] %s486_s6 }
  0x6d   : > { %s476_s9 = scalar_lea.sflag [#allocation3], %s475_s17  ;;  %s3229_s13 = scalar_lea.hbm %s3581_s5, 128 }
  0x6e   : > { %p3230_p13 = scmp.ne.s32.totalorder %s3581_s5, %s3229_s13  ;;  %p3231_p2 = pneg %p3585_p7 }
  0x6f   : > { %s3234_s22 = scalar_lea.hbm %s3931_s0, 256  ;;  %p3235_p10 = scmp.lt.s32.totalorder %s3581_s5, %s3931_s0 }
  0x70   : > { %p3232_p5 = pnand %p3231_p2, %p3230_p13  ;;  %p3236_p8 = scmp.lt.s32.totalorder %s3234_s22, %s3229_s13 }
  0x72   : > { %p3233_p9 = pneg %p3232_p5  ;;  %p3237_p11 = por %p3236_p8, %p3235_p10 }
  0x74   : > { %p3238_p4 = pnand %p3237_p11, %p3233_p9 }
  0x76   : > { %3241 = shalt.err (!%p3238_p4)
}
  0x77   : > { %s3242_s27 = scalar_lea.vmem %s487_s6, 128  ;;  %s3343_s17 = smov [#allocation2]  }
  0x78   : > { %p3243_p1 = scmp.ne.s32.totalorder %s487_s6, %s3242_s27  ;;  %s3247_s21 = sshll.u32 %s3343_s17, 4  ;;  %s3248_s21 = int_to_ptr.vmem [resolvable:$false] %s3247_s21 }
  0x79   : > { %s3249_s15 = scalar_lea.vmem %s3248_s21, 256  ;;  %p3250_p13 = scmp.lt.s32.totalorder %s487_s6, %s3248_s21 }
  0x7a   : > { %p3245_p0 = pnand %p3243_p1, %p3231_p2  ;;  %p3251_p5 = scmp.lt.s32.totalorder %s3249_s15, %s3242_s27 }
  0x7c   : > { %p3246_p12 = pneg %p3245_p0  ;;  %p3252_p6 = por %p3251_p5, %p3250_p13 }
  0x7e   : > { %p3253_p3 = pnand %p3252_p6, %p3246_p12 }
  0x80   : > { %3256 = shalt.err (!%p3253_p3)
}
  0x81   : > { %2951 = dma.hbm_to_vmem [thread:$0]  (!%p3585_p7), %s3581_s5, 128, %s487_s6, %s476_s9  }
  0x82   : > { %p3975_p9 = scmp.ne.s32.totalorder %s3960_s20, 0 }
  0x83   : > { %s3606_s13 = sand.u32 (!%p3975_p9), 1, %s3325_s30   ;;  %p3976_p1 = scmp.ne.s32.totalorder (!%p3975_p9), %s3971_s28, 0 }
  0x84   : > { %495 = sbr.rel (%p3975_p9) target bundleno = 5122 (0x1402), region = 76  ;;  %s2579_s3 = sshll.u32 (!%p3975_p9), %s3606_s13, 3 }
  0x85   : > { %s498_s21 = scalar_lea.sflag (!%p3975_p9), [#allocation3], %s3606_s13  ;;  %s501_s15 = scalar_lea.vmem (!%p3975_p9), [#allocation2], %s2579_s3 }
  0x89   : > { %3300 = dma.done.wait (%p3976_p1), %s498_s21, 128  }
  0x8a   : > { %3302 = vsyncadd (%p3976_p1), %s498_s21, 4294967168  ;;  %p3977_p3 = scmp.eq.s32.totalorder %s3443_s19, 0 }
  0x8c   : > { %3304 = dma.done.wait (%p3977_p3), [#allocation6], 64   ;;  %p3978_p4 = pmov %p3977_p3 }
  0x8d   : > { %p3979_p6 = pmov %p3977_p3 }
  0x8e   : > { %3306 = vsyncadd (%p3978_p4), [#allocation6], 4294967232 }
  0x8f   : > { %3308 = dma.done.wait (%p3979_p6), [#allocation9], 64   ;;  %p3980_p12 = pmov %p3977_p3 }
  0x90   : > { %p3981_p0 = pmov %p3977_p3 }
  0x91   : > { %3310 = vsyncadd (%p3980_p12), [#allocation9], 4294967232 }
  0x92   : > { %3312 = dma.done.wait (%p3981_p0), [#allocation12], 64   ;;  %p3982_p7 = pmov %p3981_p0 }
  0x93   : > { %v3344_v0 = vmov 0.0   ;;  %vm3345_vm0 = vmmov 0   ;;  %v3013_v1 = vld [vmem:[%s3933_s2 + $0x8] sm:$0xff]   ;;  %v3014_v2 = vld [vmem:[%s3933_s2] sm:$0xff]   ;;  %vm598_vm1 = vcmask 261120   ;;  %vm706_vm2 = vcmask 1043456  }
  0x94   : > { %3314 = vsyncadd (%p3982_p7), [#allocation12], 4294967232  ;;  %2733 = vmatprep.subr.bf16.mxu0 %v3344_v0  ;;  %2737 = vmatprep.mubr.msk.bf16.mxu0 %vm3345_vm0, %v3344_v0  ;;  %v571_v3 = vld [vmem:[%s501_s15] sm:$0xff]  ;;  %v2587_v7 = vld [vmem:[#allocation5] ss:$0 sm:$0xff]  ;;  %vm702_vm3 = vcmask 64512  }
  0x95   : > { %2747 = vmatprep.subr.bf16.mxu1 %v3344_v0  ;;  %2749 = vmatprep.mubr.msk.bf16.mxu1 %vm3345_vm0, %v3344_v0  ;;  %v572_v4 = vld [vmem:[%s3932_s1] sm:$0xff]  ;;  %vm1422_vm4 = vcmask 523264   ;;  %s2670_s14 = sshll.u32 %s3443_s19, 7  ;;  %s569_s23 = scalar_lea.vmem [#allocation14], %s2579_s3 }
  0x96   : > { %2734 = vmatpush3.bf16.msra.mxu0 %v3013_v1  ;;  %v3644_v5 = vadd.f32 %v572_v4, %v571_v3  ;;  %s2440_s27 = sshll.u32 %s569_s23, 4  ;;  %s3983_s15 = sld [smem:[#allocation28_spill]]  ;;  %s2441_s27 = int_to_ptr.vmem [resolvable:$true] %s2440_s27 }
  0x97   : > { %2735 = vmatprep.subr.bf16.mxu0 %v3344_v0  ;;  %s2427_s7 = scalar_lea.sflag [#allocation4], %s3606_s13  ;;  %s3257_s9 = scalar_lea.vmem %s2441_s27, 128 }
  0x98   : > { %v574_v6 = vpack.c.bf16 %v3644_v5, %v3644_v5  ;;  %p3258_p2 = scmp.ne.s32.totalorder %s2441_s27, %s3257_s9  ;;  %p3985_p10 = scmp.ne.s32.totalorder %s3972_s18, 0 }
  0x99   : > { %s3346_s20 = smov [#allocation14]  }
  0x9a   : > { %2736 = vmatpush3.bf16.msra.mxu0 %v3014_v2  ;;  %p3259_p8 = pnand %p3258_p2, %p3985_p10  ;;  %s3261_s19 = sshll.u32 %s3346_s20, 4  ;;  %s3262_s19 = int_to_ptr.vmem [resolvable:$false] %s3261_s19 }
  0x9b   : > { %2741 = vmatprep.subr.bf16.mxu0 %v3344_v0  ;;  %s3263_s3 = scalar_lea.vmem %s3262_s19, 256  ;;  %p3264_p13 = scmp.lt.s32.totalorder %s2441_s27, %s3262_s19 }
  0x9c   : > { %s3984_s5 = smov %s3983_s15  ;;  %s2438_s6 = scalar_lea.hbm %s3983_s15, %s2670_s14 }
  0x9d   : > { %2738 = vmatmul.mubr.msk.bf16.vlgmr.msra.gmra.mxu0 %vm598_vm1, %v574_v6  ;;  %p3260_p11 = pneg %p3259_p8  ;;  %p3265_p5 = scmp.lt.s32.totalorder %s3263_s3, %s3257_s9 }
  0x9e   : > { %2743 = vmatprep.mubr.msk.bf16.mxu0 %vm3345_vm0, %v3344_v0 }
  0x9f   : > { %p3266_p9 = por %p3265_p5, %p3264_p13 }
  0xa1   : > { %p3267_p1 = pnand %p3266_p9, %p3260_p11 }
 0x15d   : > { %v636_v8 = vpop.f32.mrf.mxu0 }
 0x15e   : > { %v637_v9 = vadd.f32 %v2587_v7, %v636_v8 }
 0x15f   : > { %v2739_v10 = vpop.f32.mrf.mxu0 }
 0x160   : > { %642 = vxpose.xlu0.b32.start.end [1/1] (short) (narrow) %v637_v9, 96 }
 0x161   : > { %v639_v11 = vpop.f32.mrf.mxu0 }
 0x163   : > { %v2740_v12 = vpop.f32.mrf.mxu0 }
 0x1dc   : > { %v658_v13 = vpop.trf.xlu0 }
 0x1dd   : > { %v674_v14 = vpack.c.bf16 %v658_v13, %v658_v13 }
 0x1df   : > { %686 = vxpose.xlu0.c.b16.start.end [1/1] (short) (narrow) %v674_v14, 16 }
 0x1e0   : > { %v659_v15 = vpop.trf.xlu0 }
 0x1e1   : > { %v675_v16 = vpack.c.bf16 %v659_v15, %v659_v15 }
 0x1e3   : > { %750 = vxpose.xlu1.c.b16.start.end [1/1] (short) (narrow) %v675_v16, 16 }
 0x1e4   : > { %v660_v17 = vpop.trf.xlu0 }
 0x1e5   : > { %v676_v18 = vpack.c.bf16 %v660_v17, %v660_v17 }
 0x1e7   : > { %812 = vxpose.xlu1.c.b16.start.end [1/1] (short) (narrow) %v676_v18, 16 }
 0x1e8   : > { %v661_v19 = vpop.trf.xlu0 }
 0x1e9   : > { %v677_v20 = vpack.c.bf16 %v661_v19, %v661_v19 }
 0x1eb   : > { %874 = vxpose.xlu1.c.b16.start.end [1/1] (short) (narrow) %v677_v20, 16 }
 0x1ec   : > { %v662_v21 = vpop.trf.xlu0 }
 0x1ed   : > { %v678_v22 = vpack.c.bf16 %v662_v21, %v662_v21 }
 0x1ef   : > { %v708_v23 = vsel %vm706_vm2, %v678_v22, 0 }
 0x1f0   : > { %2742 = vmatpush3.bf16.msra.mxu0 %v708_v23  ;;  %v663_v24 = vpop.trf.xlu0 }
 0x1f1   : > { %v679_v25 = vpack.c.bf16 %v663_v24, %v663_v24  ;;  %2753 = vmatprep.subr.bf16.mxu0 %v3344_v0 }
 0x1f3   : > { %v770_v26 = vsel %vm706_vm2, %v679_v25, 0 }
 0x1f4   : > { %2748 = vmatpush3.bf16.msra.mxu1 %v770_v26  ;;  %v664_v27 = vpop.trf.xlu0 }
 0x1f5   : > { %2759 = vmatprep.subr.bf16.mxu1 %v3344_v0  ;;  %v680_v33 = vpack.c.bf16 %v664_v27, %v664_v27 }
 0x1f7   : > { %v832_v35 = vsel %vm706_vm2, %v680_v33, 0 }
 0x1f8   : > { %v665_v28 = vpop.trf.xlu0 }
 0x1f9   : > { %v681_v36 = vpack.c.bf16 %v665_v28, %v665_v28 }
 0x1fb   : > { %v894_v38 = vsel %vm706_vm2, %v681_v36, 0 }
 0x1fc   : > { %v3656_v29 = vpop.trf.xlu0 }
 0x200   : > { %v3658_v30 = vpop.trf.xlu0 }
 0x204   : > { %v3660_v31 = vpop.trf.xlu0 }
 0x208   : > { %v3662_v32 = vpop.trf.xlu0 }
 0x241   : > { %v694_v34 = vpop.trf.xlu0 }
 0x242   : > { %2744 = vmatmul.mubr.msk.bf16.vlgmr.msra.gmra.mxu0 %vm702_vm3, %v694_v34 }
 0x243   : > { %2754 = vmatpush3.bf16.msra.mxu0 %v832_v35  ;;  %2755 = vmatprep.mubr.msk.bf16.mxu0 %vm3345_vm0, %v3344_v0 }
 0x244   : > { %2765 = vmatprep.subr.bf16.mxu0 %v3344_v0 }
 0x245   : > { %v758_v37 = vpop.trf.xlu1 }
 0x246   : > { %2750 = vmatmul.mubr.msk.bf16.vlgmr.msra.gmra.mxu1 %vm702_vm3, %v758_v37 }
 0x247   : > { %2760 = vmatpush3.bf16.msra.mxu1 %v894_v38  ;;  %2761 = vmatprep.mubr.msk.bf16.mxu1 %vm3345_vm0, %v3344_v0 }
 0x248   : > { %2771 = vmatprep.subr.bf16.mxu1 %v3344_v0 }
 0x249   : > { %v820_v39 = vpop.trf.xlu1 }
 0x24a   : > { %2756 = vmatmul.mubr.msk.bf16.vlgmr.msra.gmra.mxu0 %vm702_vm3, %v820_v39 }
 0x24b   : > { %2767 = vmatprep.mubr.msk.bf16.mxu0 %vm3345_vm0, %v3344_v0 }
 0x24d   : > { %v882_v40 = vpop.trf.xlu1 }
 0x24e   : > { %2762 = vmatmul.mubr.msk.bf16.vlgmr.msra.gmra.mxu1 %vm702_vm3, %v882_v40 }
 0x24f   : > { %2773 = vmatprep.mubr.msk.bf16.mxu1 %vm3345_vm0, %v3344_v0 }
 0x302   : > { %v744_v41 = vpop.f32.mrf.mxu0 }
 0x303   : > { %v936_v42 = vmul.f32 0.35355338, %v744_v41 }
 0x304   : > { %v2745_v43 = vpop.f32.mrf.mxu0 }
 0x305   : > { %v940_v44 = vsel %vm702_vm3, %v936_v42, -inf }
 0x306   : > { %v806_v45 = vpop.f32.mrf.mxu1  ;;  %941 = vmax.xlane.f32.xlu1 %v940_v44  ;;  %v747_v46 = vpop.f32.mrf.mxu0 }
 0x307   : > { %v937_v47 = vmul.f32 0.35355338, %v806_v45 }
 0x308   : > { %v2746_v48 = vpop.f32.mrf.mxu0  ;;  %v2751_v49 = vpop.f32.mrf.mxu1 }
 0x309   : > { %v943_v50 = vsel %vm702_vm3, %v937_v47, -inf }
 0x30a   : > { %v809_v51 = vpop.f32.mrf.mxu1  ;;  %944 = vmax.xlane.f32.xlu1 %v943_v50  ;;  %v868_v52 = vpop.f32.mrf.mxu0 }
 0x30b   : > { %v938_v53 = vmul.f32 0.35355338, %v868_v52 }
 0x30c   : > { %v2752_v54 = vpop.f32.mrf.mxu1  ;;  %v2757_v55 = vpop.f32.mrf.mxu0 }
 0x30d   : > { %v946_v56 = vsel %vm702_vm3, %v938_v53, -inf }
 0x30e   : > { %v930_v57 = vpop.f32.mrf.mxu1  ;;  %947 = vmax.xlane.f32.xlu1 %v946_v56  ;;  %v871_v58 = vpop.f32.mrf.mxu0 }
 0x30f   : > { %v939_v59 = vmul.f32 0.35355338, %v930_v57  ;;  %v683_v58 = vpack.c.bf16 %v3658_v30, %v3658_v30  ;;  %v685_v30 = vpack.c.bf16 %v3662_v32, %v3662_v32 }
 0x310   : > { %v2758_v60 = vpop.f32.mrf.mxu0  ;;  %v2763_v61 = vpop.f32.mrf.mxu1 }
 0x311   : > { %v949_v62 = vsel %vm702_vm3, %v939_v59, -inf  ;;  %v684_v60 = vpack.c.bf16 %v3660_v31, %v3660_v31  ;;  %v3015_v61 = vld [vmem:[%s3935_s4 + $0x8] sm:$0xff]   ;;  %v3016_v31 = vld [vmem:[%s3935_s4] sm:$0xff]  }
 0x312   : > { %v933_v63 = vpop.f32.mrf.mxu1  ;;  %950 = vmax.xlane.f32.xlu1 %v949_v62 }
 0x314   : > { %v2764_v1 = vpop.f32.mrf.mxu1 }
 0x38f   : > { %v942_v2 = vpop.xlane.xlu1 %941 }
 0x390   : > { %v952_v3 = vsub.f32 %v936_v42, %v942_v2 }
 0x392   : > { %v956_v4 = vmul.f32 1.442695, %v952_v3 }
 0x393   : > { %v945_v6 = vpop.xlane.xlu1 %944 }
 0x394   : > { %3033 = vpow2.f32 %v956_v4  ;;  %v953_v7 = vsub.f32 %v937_v47, %v945_v6 }
 0x396   : > { %v958_v8 = vmul.f32 1.442695, %v953_v7 }
 0x397   : > { %v948_v9 = vpop.xlane.xlu1 %947 }
 0x398   : > { %3035 = vpow2.f32 %v958_v8  ;;  %v954_v10 = vsub.f32 %v938_v53, %v948_v9  ;;  %v682_v53 = vpack.c.bf16 %v3656_v29, %v3656_v29 }
 0x39a   : > { %v960_v11 = vmul.f32 1.442695, %v954_v10 }
 0x39b   : > { %v951_v12 = vpop.xlane.xlu1 %950 }
 0x39c   : > { %3037 = vpow2.f32 %v960_v11  ;;  %v955_v13 = vsub.f32 %v939_v59, %v951_v12 }
 0x39e   : > { %v962_v14 = vmul.f32 1.442695, %v955_v13 }
 0x3a0   : > { %3039 = vpow2.f32 %v962_v14 }
 0x3a1   : > { %v3034_v15 = vpop.eup %3033 }
 0x3a2   : > { %v964_v16 = vsel %vm702_vm3, %v3034_v15, 0.0 }
 0x3a3   : > { %965 = vadd.xlane.f32.xlu1 %v964_v16 }
 0x3a5   : > { %v3036_v17 = vpop.eup %3035 }
 0x3a6   : > { %v967_v18 = vsel %vm702_vm3, %v3036_v17, 0.0 }
 0x3a7   : > { %968 = vadd.xlane.f32.xlu1 %v967_v18 }
 0x3a9   : > { %v3038_v19 = vpop.eup %3037 }
 0x3aa   : > { %v970_v20 = vsel %vm702_vm3, %v3038_v19, 0.0 }
 0x3ab   : > { %971 = vadd.xlane.f32.xlu1 %v970_v20 }
 0x3ad   : > { %v3040_v21 = vpop.eup %3039 }
 0x3ae   : > { %v973_v22 = vsel %vm702_vm3, %v3040_v21, 0.0 }
 0x3af   : > { %974 = vadd.xlane.f32.xlu1 %v973_v22 }
 0x42c   : > { %v966_v23 = vpop.xlane.xlu1 %965 }
 0x42d   : > { %3041 = vrcp.f32 %v966_v23 }
 0x430   : > { %v969_v24 = vpop.xlane.xlu1 %968 }
 0x431   : > { %3043 = vrcp.f32 %v969_v24 }
 0x434   : > { %v972_v25 = vpop.xlane.xlu1 %971 }
 0x435   : > { %3045 = vrcp.f32 %v972_v25 }
 0x438   : > { %v975_v26 = vpop.xlane.xlu1 %974 }
 0x439   : > { %3047 = vrcp.f32 %v975_v26 }
 0x43a   : > { %v3042_v27 = vpop.eup %3041 }
 0x43b   : > { %v980_v28 = vmul.f32 %v3042_v27, %v966_v23 }
 0x43d   : > { %v984_v33 = vsub.f32 2.0, %v980_v28 }
 0x43e   : > { %v3044_v34 = vpop.eup %3043 }
 0x43f   : > { %v988_v35 = vmul.f32 %v3042_v27, %v984_v33  ;;  %v981_v36 = vmul.f32 %v3044_v34, %v969_v24 }
 0x441   : > { %v985_v37 = vsub.f32 2.0, %v981_v36  ;;  %v992_v38 = vmul.f32 %v3034_v15, %v988_v35  ;;  %v3019_v35 = vld [vmem:[%s3941_s10 + $0x18] sm:$0xff]   ;;  %v3020_v36 = vld [vmem:[%s3941_s10 + $0x10] sm:$0xff]  }
 0x442   : > { %v3046_v39 = vpop.eup %3045 }
 0x443   : > { %v989_v40 = vmul.f32 %v3044_v34, %v985_v37  ;;  %v982_v41 = vmul.f32 %v3046_v39, %v972_v25  ;;  %v996_v42 = vpack.c.bf16 %v992_v38, %v992_v38  ;;  %v3017_v34 = vld [vmem:[%s3939_s8 + $0x8] sm:$0xff]  }
 0x445   : > { %v986_v43 = vsub.f32 2.0, %v982_v41  ;;  %v1004_v44 = vsel %vm702_vm3, %v996_v42, 0  ;;  %v993_v45 = vmul.f32 %v3036_v17, %v989_v40  ;;  %v2599_v17 = vld [vmem:[#allocation7] ss:$0 sm:$0xff]  ;;  %v2603_v41 = vld [vmem:[#allocation8] ss:$0 sm:$0xff] }
 0x446   : > { %v3048_v46 = vpop.eup %3047  ;;  %2766 = vmatpush3.bf16.xpose.msra.mxu0 %v1004_v44 }
 0x447   : > { %v990_v47 = vmul.f32 %v3046_v39, %v986_v43  ;;  %v983_v48 = vmul.f32 %v3048_v46, %v975_v26  ;;  %v997_v49 = vpack.c.bf16 %v993_v45, %v993_v45  ;;  %2777 = vmatprep.subr.bf16.mxu0 %v3344_v0  ;;  %v2604_v43 = vld [vmem:[#allocation10] ss:$0 sm:$0xff] }
 0x449   : > { %v987_v50 = vsub.f32 2.0, %v983_v48  ;;  %v1050_v51 = vsel %vm702_vm3, %v997_v49, 0  ;;  %v994_v52 = vmul.f32 %v3038_v19, %v990_v47  ;;  %v3021_v47 = vld [vmem:[%s3941_s10 + $0x8] sm:$0xff]   ;;  %v3022_v48 = vld [vmem:[%s3941_s10] sm:$0xff]   ;;  %v2605_v49 = vld [vmem:[#allocation11] ss:$0 sm:$0xff] }
 0x44a   : > { %2772 = vmatpush3.bf16.xpose.msra.mxu1 %v1050_v51 }
 0x44b   : > { %v991_v54 = vmul.f32 %v3048_v46, %v987_v50  ;;  %v998_v55 = vpack.c.bf16 %v994_v52, %v994_v52  ;;  %2783 = vmatprep.subr.bf16.mxu1 %v3344_v0 }
 0x44d   : > { %2768 = vmatmul.mubr.msk.bf16.vlgmr.msra.gmra.mxu0 %vm702_vm3, %v682_v53  ;;  %v1096_v56 = vsel %vm702_vm3, %v998_v55, 0  ;;  %v995_v57 = vmul.f32 %v3040_v21, %v991_v54 }
 0x44e   : > { %2778 = vmatpush3.bf16.xpose.msra.mxu0 %v1096_v56  ;;  %2779 = vmatprep.mubr.msk.bf16.mxu0 %vm3345_vm0, %v3344_v0 }
 0x44f   : > { %v999_v59 = vpack.c.bf16 %v995_v57, %v995_v57  ;;  %2789 = vmatprep.subr.bf16.mxu0 %v3344_v0  ;;  %v2609_v57 = vld [vmem:[%s3942_s11] ss:$0 sm:$0xff] }
 0x451   : > { %2774 = vmatmul.mubr.msk.bf16.vlgmr.msra.gmra.mxu1 %vm702_vm3, %v683_v58  ;;  %v1142_v29 = vsel %vm702_vm3, %v999_v59, 0 }
 0x452   : > { %2784 = vmatpush3.bf16.xpose.msra.mxu1 %v1142_v29  ;;  %2785 = vmatprep.mubr.msk.bf16.mxu1 %vm3345_vm0, %v3344_v0 }
 0x453   : > { %2797 = vmatprep.subr.bf16.mxu1 %v3344_v0 }
 0x455   : > { %2780 = vmatmul.mubr.msk.bf16.vlgmr.msra.gmra.mxu0 %vm702_vm3, %v684_v60 }
 0x456   : > { %2793 = vmatprep.mubr.msk.bf16.mxu0 %vm3345_vm0, %v3344_v0  ;;  %2790 = vmatpush3.bf16.msra.mxu0 %v3015_v61 }
 0x457   : > { %2791 = vmatprep.subr.bf16.mxu0 %v3344_v0 }
 0x459   : > { %2786 = vmatmul.mubr.msk.bf16.vlgmr.msra.gmra.mxu1 %vm702_vm3, %v685_v30 }
 0x45a   : > { %2801 = vmatprep.mubr.msk.bf16.mxu1 %vm3345_vm0, %v3344_v0  ;;  %2792 = vmatpush3.bf16.msra.mxu0 %v3016_v31 }
 0x45b   : > { %2805 = vmatprep.subr.bf16.mxu0 %v3344_v0  ;;  %2798 = vmatpush3.bf16.msra.mxu1 %v3017_v34 }
 0x45c   : > { %2799 = vmatprep.subr.bf16.mxu1 %v3344_v0 }
 0x50d   : > { %v1040_v32 = vpop.f32.mrf.mxu0 }
 0x50e   : > { %1184 = vxpose.xlu1.b32.start [1/4] (short) (narrow) %v1040_v32, 8 }
 0x50f   : > { %v2769_v62 = vpop.f32.mrf.mxu0 }
 0x511   : > { %v1043_v63 = vpop.f32.mrf.mxu0  ;;  %v1086_v1 = vpop.f32.mrf.mxu1 }
 0x512   : > { %1185 = vxpose.xlu1.b32.cont [2/4] (short) (narrow) %v1086_v1, 8 }
 0x513   : > { %v2770_v2 = vpop.f32.mrf.mxu0  ;;  %v2775_v3 = vpop.f32.mrf.mxu1 }
 0x514   : > { %v3023_v3 = vld [vmem:[%s3933_s2 + $0x18] sm:$0xff]  }
 0x515   : > { %v1089_v4 = vpop.f32.mrf.mxu1  ;;  %v1132_v6 = vpop.f32.mrf.mxu0 }
 0x516   : > { %1186 = vxpose.xlu1.b32.cont [3/4] (short) (narrow) %v1132_v6, 8  ;;  %v3024_v4 = vld [vmem:[%s3933_s2 + $0x10] sm:$0xff]  }
 0x517   : > { %v2776_v7 = vpop.f32.mrf.mxu1  ;;  %v2781_v8 = vpop.f32.mrf.mxu0 }
 0x519   : > { %v1135_v9 = vpop.f32.mrf.mxu0  ;;  %v1178_v10 = vpop.f32.mrf.mxu1 }
 0x51a   : > { %1187 = vxpose.xlu1.b32.end [4/4] (short) (narrow) %v1178_v10, 8  ;;  %v2615_v10 = vld [vmem:[%s3943_s12] ss:$0 sm:$0xff] }
 0x51b   : > { %v2782_v11 = vpop.f32.mrf.mxu0  ;;  %v2787_v12 = vpop.f32.mrf.mxu1 }
 0x51c   : > { %v2616_v12 = vld [vmem:[#allocation13] ss:$0 sm:$0xff] }
 0x51d   : > { %v1181_v13 = vpop.f32.mrf.mxu1 }
 0x51f   : > { %v2788_v14 = vpop.f32.mrf.mxu1 }
 0x58a   : > { %v1200_v15 = vpop.trf.xlu1 }
 0x58b   : > { %v1216_v16 = vpack.c.bf16 %v1200_v15, %v1200_v15 }
 0x58d   : > { %2794 = vmatmul.mubr.msk.bf16.vlgmr.msra.gmra.mxu0 %vm598_vm1, %v1216_v16  ;;  %v2621_v16 = vld [vmem:[#allocation5 + $0x1] ss:$0 sm:$0xff] }
 0x58e   : > { %2813 = vmatprep.mubr.msk.bf16.mxu0 %vm3345_vm0, %v3344_v0  ;;  %2806 = vmatpush3.bf16.msra.mxu0 %v3019_v35 }
 0x58f   : > { %2807 = vmatprep.subr.bf16.mxu0 %v3344_v0 }
 0x592   : > { %2808 = vmatpush3.bf16.msra.mxu0 %v3020_v36 }
 0x593   : > { %2809 = vmatprep.subr.bf16.mxu0 %v3344_v0 }
 0x596   : > { %2810 = vmatpush3.bf16.msra.mxu0 %v3021_v47 }
 0x597   : > { %2811 = vmatprep.subr.bf16.mxu0 %v3344_v0 }
 0x59a   : > { %2812 = vmatpush3.bf16.msra.mxu0 %v3022_v48 }
 0x59b   : > { %2831 = vmatprep.subr.bf16.mxu0 %v3344_v0 }
 0x64d   : > { %v1277_v18 = vpop.f32.mrf.mxu0 }
 0x64e   : > { %v1278_v19 = vadd.f32 %v2599_v17, %v1277_v18 }
 0x64f   : > { %v2795_v20 = vpop.f32.mrf.mxu0 }
 0x650   : > { %v1283_v21 = vadd.f32 %v1278_v19, %v3644_v5  ;;  %v3018_v5 = vld [vmem:[%s3939_s8] sm:$0xff]  }
 0x651   : > { %v1280_v22 = vpop.f32.mrf.mxu0  ;;  %2800 = vmatpush3.bf16.msra.mxu1 %v3018_v5 }
 0x652   : > { %v1284_v23 = vsel %vm598_vm1, %v1283_v21, 0.0  ;;  %2817 = vmatprep.subr.bf16.mxu1 %v3344_v0 }
 0x653   : > { %1285 = vadd.xlane.f32.xlu0 %v1284_v23  ;;  %v2796_v24 = vpop.f32.mrf.mxu0 }
 0x6dc   : > { %v1286_v25 = vpop.xlane.xlu0 %1285 }
 0x6dd   : > { %v1288_v26 = vmul.f32 0.03125, %v1286_v25 }
 0x6df   : > { %v1289_v27 = vsub.f32 %v1283_v21, %v1288_v26 }
 0x6e1   : > { %v1290_v28 = vmul.f32 %v1289_v27, %v1289_v27 }
 0x6e3   : > { %v1291_v33 = vsel %vm598_vm1, %v1290_v28, 0.0 }
 0x6e4   : > { %1292 = vadd.xlane.f32.xlu0 %v1291_v33 }
 0x76d   : > { %v1293_v37 = vpop.xlane.xlu0 %1292 }
 0x76e   : > { %v1294_v38 = vmul.f32 0.03125, %v1293_v37 }
 0x770   : > { %v1295_v39 = vadd.f32 1e-05, %v1294_v38 }
 0x772   : > { %3049 = vrsqrt.f32 %v1295_v39 }
 0x77f   : > { %v3050_v40 = vpop.eup %3049 }
 0x780   : > { %v1297_v42 = vmul.f32 %v3050_v40, %v1289_v27 }
 0x782   : > { %v1305_v44 = vmul.f32 %v2603_v41, %v1297_v42 }
 0x784   : > { %v1313_v45 = vadd.f32 %v2604_v43, %v1305_v44 }
 0x786   : > { %v1314_v46 = vpack.c.bf16 %v1313_v45, %v1313_v45 }
 0x788   : > { %2802 = vmatmul.mubr.msk.bf16.vlgmr.msra.gmra.mxu1 %vm598_vm1, %v1314_v46 }
 0x789   : > { %2821 = vmatprep.mubr.msk.bf16.mxu1 %vm3345_vm0, %v3344_v0  ;;  %2818 = vmatpush3.bf16.msra.mxu1 %v3023_v3 }
 0x78a   : > { %2819 = vmatprep.subr.bf16.mxu1 %v3344_v0 }
 0x78d   : > { %2820 = vmatpush3.bf16.msra.mxu1 %v3024_v4 }
 0x78e   : > { %2825 = vmatprep.subr.bf16.mxu1 %v3344_v0 }
 0x848   : > { %v1375_v50 = vpop.f32.mrf.mxu1 }
 0x849   : > { %v1376_v51 = vadd.f32 %v2605_v49, %v1375_v50 }
 0x84a   : > { %v2803_v52 = vpop.f32.mrf.mxu1 }
 0x84b   : > { %v1381_v53 = vmax.f32 %v1376_v51, 0.0 }
 0x84c   : > { %v1378_v54 = vpop.f32.mrf.mxu1 }
 0x84d   : > { %v1382_v55 = vpack.c.bf16 %v1381_v53, %v1381_v53 }
 0x84e   : > { %v2804_v56 = vpop.f32.mrf.mxu1 }
 0x84f   : > { %2814 = vmatmul.mubr.msk.bf16.vlgmr.msra.gmra.mxu0 %vm1422_vm4, %v1382_v55 }
 0x850   : > { %2833 = vmatprep.mubr.msk.bf16.mxu0 %vm3345_vm0, %v3344_v0 }
 0x90f   : > { %v1460_v58 = vpop.f32.mrf.mxu0 }
 0x910   : > { %v1461_v59 = vadd.f32 %v2609_v57, %v1460_v58 }
 0x911   : > { %v2815_v29 = vpop.f32.mrf.mxu0 }
 0x912   : > { %v1466_v60 = vadd.f32 %v1461_v59, %v1313_v45 }
 0x913   : > { %v1463_v30 = vpop.f32.mrf.mxu0 }
 0x914   : > { %v1467_v61 = vsel %vm598_vm1, %v1466_v60, 0.0 }
 0x915   : > { %1468 = vadd.xlane.f32.xlu0 %v1467_v61  ;;  %v2816_v31 = vpop.f32.mrf.mxu0 }
 0x99e   : > { %v1469_v32 = vpop.xlane.xlu0 %1468 }
 0x99f   : > { %v1470_v62 = vmul.f32 0.03125, %v1469_v32 }
 0x9a1   : > { %v1471_v63 = vsub.f32 %v1466_v60, %v1470_v62 }
 0x9a3   : > { %v1472_v1 = vmul.f32 %v1471_v63, %v1471_v63 }
 0x9a5   : > { %v1473_v2 = vsel %vm598_vm1, %v1472_v1, 0.0 }
 0x9a6   : > { %1474 = vadd.xlane.f32.xlu0 %v1473_v2 }
 0xa2f   : > { %v1475_v6 = vpop.xlane.xlu0 %1474 }
 0xa30   : > { %v1476_v7 = vmul.f32 0.03125, %v1475_v6 }
 0xa32   : > { %v1477_v8 = vadd.f32 1e-05, %v1476_v7 }
 0xa34   : > { %3051 = vrsqrt.f32 %v1477_v8 }
 0xa41   : > { %v3052_v9 = vpop.eup %3051 }
 0xa42   : > { %v1479_v11 = vmul.f32 %v3052_v9, %v1471_v63 }
 0xa44   : > { %v1487_v13 = vmul.f32 %v2615_v10, %v1479_v11 }
 0xa46   : > { %v3776_v14 = vadd.f32 %v2616_v12, %v1487_v13 }
 0xa48   : > { %v1496_v15 = vpack.c.bf16 %v3776_v14, %v3776_v14 }
 0xa4a   : > { %2822 = vmatmul.mubr.msk.bf16.vlgmr.msra.gmra.mxu1 %vm598_vm1, %v1496_v15 }
 0xa4b   : > { %2827 = vmatprep.mubr.msk.bf16.mxu1 %vm3345_vm0, %v3344_v0 }
 0xb0a   : > { %v1559_v17 = vpop.f32.mrf.mxu1 }
 0xb0b   : > { %v1560_v18 = vadd.f32 %v2621_v16, %v1559_v17 }
 0xb0c   : > { %v2823_v19 = vpop.f32.mrf.mxu1 }
 0xb0d   : > { %1565 = vxpose.xlu0.b32.start.end [1/1] (short) (narrow) %v1560_v18, 96 }
 0xb0e   : > { %v1562_v20 = vpop.f32.mrf.mxu1 }
 0xb10   : > { %v2824_v21 = vpop.f32.mrf.mxu1 }
 0xb89   : > { %v1581_v22 = vpop.trf.xlu0 }
 0xb8a   : > { %v1597_v23 = vpack.c.bf16 %v1581_v22, %v1581_v22 }
 0xb8c   : > { %1609 = vxpose.xlu1.c.b16.start.end [1/1] (short) (narrow) %v1597_v23, 16 }
 0xb8d   : > { %v1582_v24 = vpop.trf.xlu0 }
 0xb8e   : > { %v1598_v25 = vpack.c.bf16 %v1582_v24, %v1582_v24 }
 0xb90   : > { %1671 = vxpose.xlu1.c.b16.start.end [1/1] (short) (narrow) %v1598_v25, 16 }
 0xb91   : > { %v1583_v26 = vpop.trf.xlu0 }
 0xb92   : > { %v1599_v27 = vpack.c.bf16 %v1583_v26, %v1583_v26 }
 0xb94   : > { %1733 = vxpose.xlu1.c.b16.start.end [1/1] (short) (narrow) %v1599_v27, 16 }
 0xb95   : > { %v1584_v28 = vpop.trf.xlu0 }
 0xb96   : > { %v1600_v33 = vpack.c.bf16 %v1584_v28, %v1584_v28 }
 0xb98   : > { %1795 = vxpose.xlu0.c.b16.start.end [1/1] (short) (narrow) %v1600_v33, 16 }
 0xb99   : > { %v1585_v34 = vpop.trf.xlu0 }
 0xb9a   : > { %v1601_v5 = vpack.c.bf16 %v1585_v34, %v1585_v34 }
 0xb9c   : > { %v1629_v35 = vsel %vm706_vm2, %v1601_v5, 0 }
 0xb9d   : > { %2826 = vmatpush3.bf16.msra.mxu1 %v1629_v35  ;;  %v1586_v36 = vpop.trf.xlu0 }
 0xb9e   : > { %v1602_v37 = vpack.c.bf16 %v1586_v36, %v1586_v36  ;;  %2837 = vmatprep.subr.bf16.mxu1 %v3344_v0 }
 0xba0   : > { %v1691_v38 = vsel %vm706_vm2, %v1602_v37, 0 }
 0xba1   : > { %2832 = vmatpush3.bf16.msra.mxu0 %v1691_v38  ;;  %v1587_v39 = vpop.trf.xlu0 }
 0xba2   : > { %2843 = vmatprep.subr.bf16.mxu0 %v3344_v0  ;;  %v1603_v43 = vpack.c.bf16 %v1587_v39, %v1587_v39 }
 0xba4   : > { %v1753_v46 = vsel %vm706_vm2, %v1603_v43, 0 }
 0xba5   : > { %v1588_v40 = vpop.trf.xlu0 }
 0xba6   : > { %v1604_v47 = vpack.c.bf16 %v1588_v40, %v1588_v40 }
 0xba8   : > { %v1815_v49 = vsel %vm706_vm2, %v1604_v47, 0 }
 0xba9   : > { %v3787_v41 = vpop.trf.xlu0 }
 0xbad   : > { %v3789_v42 = vpop.trf.xlu0 }
 0xbb1   : > { %v3791_v45 = vpop.trf.xlu0 }
 0xbb5   : > { %v3800_v50 = vpop.trf.xlu0 }
 0xbee   : > { %v1617_v44 = vpop.trf.xlu1 }
 0xbef   : > { %2828 = vmatmul.mubr.msk.bf16.vlgmr.msra.gmra.mxu1 %vm702_vm3, %v1617_v44 }
 0xbf0   : > { %2838 = vmatpush3.bf16.msra.mxu1 %v1753_v46  ;;  %2839 = vmatprep.mubr.msk.bf16.mxu1 %vm3345_vm0, %v3344_v0 }
 0xbf1   : > { %2849 = vmatprep.subr.bf16.mxu1 %v3344_v0 }
 0xbf2   : > { %v1679_v48 = vpop.trf.xlu1 }
 0xbf3   : > { %2834 = vmatmul.mubr.msk.bf16.vlgmr.msra.gmra.mxu0 %vm702_vm3, %v1679_v48 }
 0xbf4   : > { %2844 = vmatpush3.bf16.msra.mxu0 %v1815_v49  ;;  %2845 = vmatprep.mubr.msk.bf16.mxu0 %vm3345_vm0, %v3344_v0 }
 0xbf5   : > { %2855 = vmatprep.subr.bf16.mxu0 %v3344_v0 }
 0xbf6   : > { %v1741_v51 = vpop.trf.xlu1 }
 0xbf7   : > { %2840 = vmatmul.mubr.msk.bf16.vlgmr.msra.gmra.mxu1 %vm702_vm3, %v1741_v51 }
 0xbf8   : > { %2851 = vmatprep.mubr.msk.bf16.mxu1 %vm3345_vm0, %v3344_v0 }
 0xbfa   : > { %v1803_v52 = vpop.trf.xlu0 }
 0xbfb   : > { %2846 = vmatmul.mubr.msk.bf16.vlgmr.msra.gmra.mxu0 %vm702_vm3, %v1803_v52 }
 0xbfc   : > { %2857 = vmatprep.mubr.msk.bf16.mxu0 %vm3345_vm0, %v3344_v0 }
 0xcaf   : > { %v1665_v53 = vpop.f32.mrf.mxu1 }
 0xcb0   : > { %v1857_v54 = vmul.f32 0.35355338, %v1665_v53 }
 0xcb1   : > { %v2829_v55 = vpop.f32.mrf.mxu1 }
 0xcb2   : > { %v1861_v56 = vsel %vm702_vm3, %v1857_v54, -inf }
 0xcb3   : > { %1862 = vmax.xlane.f32.xlu1 %v1861_v56  ;;  %v1668_v57 = vpop.f32.mrf.mxu1  ;;  %v1727_v58 = vpop.f32.mrf.mxu0 }
 0xcb4   : > { %v1858_v59 = vmul.f32 0.35355338, %v1727_v58 }
 0xcb5   : > { %v2830_v29 = vpop.f32.mrf.mxu1  ;;  %v2835_v60 = vpop.f32.mrf.mxu0 }
 0xcb6   : > { %v1864_v30 = vsel %vm702_vm3, %v1858_v59, -inf }
 0xcb7   : > { %v1789_v61 = vpop.f32.mrf.mxu1  ;;  %1865 = vmax.xlane.f32.xlu1 %v1864_v30  ;;  %v1730_v31 = vpop.f32.mrf.mxu0 }
 0xcb8   : > { %v1859_v32 = vmul.f32 0.35355338, %v1789_v61 }
 0xcb9   : > { %v2836_v62 = vpop.f32.mrf.mxu0  ;;  %v2841_v63 = vpop.f32.mrf.mxu1 }
 0xcba   : > { %v1867_v1 = vsel %vm702_vm3, %v1859_v32, -inf }
 0xcbb   : > { %v1792_v2 = vpop.f32.mrf.mxu1  ;;  %1868 = vmax.xlane.f32.xlu1 %v1867_v1  ;;  %v1851_v3 = vpop.f32.mrf.mxu0 }
 0xcbc   : > { %v1860_v4 = vmul.f32 0.35355338, %v1851_v3  ;;  %v1606_v3 = vpack.c.bf16 %v3789_v42, %v3789_v42  ;;  %v1608_v42 = vpack.c.bf16 %v3800_v50, %v3800_v50 }
 0xcbd   : > { %v2842_v6 = vpop.f32.mrf.mxu1  ;;  %v2847_v7 = vpop.f32.mrf.mxu0 }
 0xcbe   : > { %v1870_v8 = vsel %vm702_vm3, %v1860_v4, -inf  ;;  %v1607_v6 = vpack.c.bf16 %v3791_v45, %v3791_v45  ;;  %v3025_v7 = vld [vmem:[%s3935_s4 + $0x18] sm:$0xff]   ;;  %v3026_v45 = vld [vmem:[%s3935_s4 + $0x10] sm:$0xff]  }
 0xcbf   : > { %1871 = vmax.xlane.f32.xlu1 %v1870_v8  ;;  %v1854_v9 = vpop.f32.mrf.mxu0 }
 0xcc1   : > { %v2848_v10 = vpop.f32.mrf.mxu0 }
 0xd3c   : > { %v1863_v11 = vpop.xlane.xlu1 %1862 }
 0xd3d   : > { %v1873_v12 = vsub.f32 %v1857_v54, %v1863_v11 }
 0xd3f   : > { %v1877_v13 = vmul.f32 1.442695, %v1873_v12 }
 0xd40   : > { %v1866_v15 = vpop.xlane.xlu1 %1865 }
 0xd41   : > { %3053 = vpow2.f32 %v1877_v13  ;;  %v1874_v16 = vsub.f32 %v1858_v59, %v1866_v15 }
 0xd43   : > { %v1879_v17 = vmul.f32 1.442695, %v1874_v16 }
 0xd44   : > { %v1869_v18 = vpop.xlane.xlu1 %1868 }
 0xd45   : > { %3055 = vpow2.f32 %v1879_v17  ;;  %v1875_v19 = vsub.f32 %v1859_v32, %v1869_v18  ;;  %v1605_v32 = vpack.c.bf16 %v3787_v41, %v3787_v41 }
 0xd47   : > { %v1881_v20 = vmul.f32 1.442695, %v1875_v19 }
 0xd48   : > { %v1872_v21 = vpop.xlane.xlu1 %1871 }
 0xd49   : > { %3057 = vpow2.f32 %v1881_v20  ;;  %v1876_v22 = vsub.f32 %v1860_v4, %v1872_v21 }
 0xd4b   : > { %v1883_v23 = vmul.f32 1.442695, %v1876_v22 }
 0xd4d   : > { %3059 = vpow2.f32 %v1883_v23 }
 0xd4e   : > { %v3054_v24 = vpop.eup %3053 }
 0xd4f   : > { %v1885_v25 = vsel %vm702_vm3, %v3054_v24, 0.0 }
 0xd50   : > { %1886 = vadd.xlane.f32.xlu1 %v1885_v25 }
 0xd52   : > { %v3056_v26 = vpop.eup %3055 }
 0xd53   : > { %v1888_v27 = vsel %vm702_vm3, %v3056_v26, 0.0 }
 0xd54   : > { %1889 = vadd.xlane.f32.xlu1 %v1888_v27 }
 0xd56   : > { %v3058_v28 = vpop.eup %3057 }
 0xd57   : > { %v1891_v33 = vsel %vm702_vm3, %v3058_v28, 0.0 }
 0xd58   : > { %1892 = vadd.xlane.f32.xlu1 %v1891_v33 }
 0xd5a   : > { %v3060_v34 = vpop.eup %3059 }
 0xd5b   : > { %v1894_v5 = vsel %vm702_vm3, %v3060_v34, 0.0 }
 0xd5c   : > { %1895 = vadd.xlane.f32.xlu1 %v1894_v5 }
 0xdd9   : > { %v1887_v35 = vpop.xlane.xlu1 %1886 }
 0xdda   : > { %3061 = vrcp.f32 %v1887_v35 }
 0xddd   : > { %v1890_v36 = vpop.xlane.xlu1 %1889 }
 0xdde   : > { %3063 = vrcp.f32 %v1890_v36 }
 0xde1   : > { %v1893_v37 = vpop.xlane.xlu1 %1892 }
 0xde2   : > { %3065 = vrcp.f32 %v1893_v37 }
 0xde5   : > { %v1896_v38 = vpop.xlane.xlu1 %1895 }
 0xde6   : > { %3067 = vrcp.f32 %v1896_v38 }
 0xde7   : > { %v3062_v39 = vpop.eup %3061 }
 0xde8   : > { %v1901_v40 = vmul.f32 %v3062_v39, %v1887_v35 }
 0xdea   : > { %v1905_v43 = vsub.f32 2.0, %v1901_v40 }
 0xdeb   : > { %v3064_v44 = vpop.eup %3063 }
 0xdec   : > { %v1909_v46 = vmul.f32 %v3062_v39, %v1905_v43  ;;  %v1902_v47 = vmul.f32 %v3064_v44, %v1890_v36 }
 0xdee   : > { %v1906_v48 = vsub.f32 2.0, %v1902_v47  ;;  %v1913_v49 = vmul.f32 %v3054_v24, %v1909_v46  ;;  %v3029_v46 = vld [vmem:[%s3941_s10 + $0x38] sm:$0xff]   ;;  %v3030_v47 = vld [vmem:[%s3941_s10 + $0x30] sm:$0xff]  }
 0xdef   : > { %v3066_v51 = vpop.eup %3065 }
 0xdf0   : > { %v1910_v52 = vmul.f32 %v3064_v44, %v1906_v48  ;;  %v1903_v53 = vmul.f32 %v3066_v51, %v1893_v37  ;;  %v1917_v54 = vpack.c.bf16 %v1913_v49, %v1913_v49  ;;  %v3027_v44 = vld [vmem:[%s3939_s8 + $0x18] sm:$0xff]  }
 0xdf2   : > { %v1907_v55 = vsub.f32 2.0, %v1903_v53  ;;  %v1925_v56 = vsel %vm702_vm3, %v1917_v54, 0  ;;  %v1914_v57 = vmul.f32 %v3056_v26, %v1910_v52  ;;  %v2637_v26 = vld [vmem:[#allocation7 + $0x1] ss:$0 sm:$0xff]  ;;  %v2641_v53 = vld [vmem:[#allocation8 + $0x1] ss:$0 sm:$0xff] }
 0xdf3   : > { %v3068_v58 = vpop.eup %3067  ;;  %2850 = vmatpush3.bf16.xpose.msra.mxu1 %v1925_v56 }
 0xdf4   : > { %v1911_v59 = vmul.f32 %v3066_v51, %v1907_v55  ;;  %v1904_v29 = vmul.f32 %v3068_v58, %v1896_v38  ;;  %v1918_v60 = vpack.c.bf16 %v1914_v57, %v1914_v57  ;;  %2861 = vmatprep.subr.bf16.mxu1 %v3344_v0  ;;  %v2642_v55 = vld [vmem:[#allocation10 + $0x1] ss:$0 sm:$0xff] }
 0xdf6   : > { %v1908_v30 = vsub.f32 2.0, %v1904_v29  ;;  %v1971_v61 = vsel %vm702_vm3, %v1918_v60, 0  ;;  %v1915_v31 = vmul.f32 %v3058_v28, %v1911_v59  ;;  %v3031_v59 = vld [vmem:[%s3941_s10 + $0x28] sm:$0xff]   ;;  %v3032_v29 = vld [vmem:[%s3941_s10 + $0x20] sm:$0xff]   ;;  %v2647_v60 = vld [vmem:[#allocation11 + $0x1] ss:$0 sm:$0xff] }
 0xdf7   : > { %2856 = vmatpush3.bf16.xpose.msra.mxu0 %v1971_v61 }
 0xdf8   : > { %v1912_v62 = vmul.f32 %v3068_v58, %v1908_v30  ;;  %v1919_v63 = vpack.c.bf16 %v1915_v31, %v1915_v31  ;;  %2867 = vmatprep.subr.bf16.mxu0 %v3344_v0 }
 0xdfa   : > { %2852 = vmatmul.mubr.msk.bf16.vlgmr.msra.gmra.mxu1 %vm702_vm3, %v1605_v32  ;;  %v2017_v1 = vsel %vm702_vm3, %v1919_v63, 0  ;;  %v1916_v2 = vmul.f32 %v3060_v34, %v1912_v62 }
 0xdfb   : > { %2862 = vmatpush3.bf16.xpose.msra.mxu1 %v2017_v1  ;;  %2863 = vmatprep.mubr.msk.bf16.mxu1 %vm3345_vm0, %v3344_v0 }
 0xdfc   : > { %v1920_v4 = vpack.c.bf16 %v1916_v2, %v1916_v2  ;;  %2873 = vmatprep.subr.bf16.mxu1 %v3344_v0  ;;  %v2660_v2 = vld [vmem:[%s3942_s11 + $0x1] ss:$0 sm:$0xff] }
 0xdfe   : > { %2858 = vmatmul.mubr.msk.bf16.vlgmr.msra.gmra.mxu0 %vm702_vm3, %v1606_v3  ;;  %v2063_v41 = vsel %vm702_vm3, %v1920_v4, 0 }
 0xdff   : > { %2868 = vmatpush3.bf16.xpose.msra.mxu0 %v2063_v41  ;;  %2869 = vmatprep.mubr.msk.bf16.mxu0 %vm3345_vm0, %v3344_v0 }
 0xe00   : > { %2881 = vmatprep.subr.bf16.mxu0 %v3344_v0 }
 0xe02   : > { %2864 = vmatmul.mubr.msk.bf16.vlgmr.msra.gmra.mxu1 %vm702_vm3, %v1607_v6 }
 0xe03   : > { %2877 = vmatprep.mubr.msk.bf16.mxu1 %vm3345_vm0, %v3344_v0  ;;  %2874 = vmatpush3.bf16.msra.mxu1 %v3025_v7 }
 0xe04   : > { %2875 = vmatprep.subr.bf16.mxu1 %v3344_v0 }
 0xe06   : > { %2870 = vmatmul.mubr.msk.bf16.vlgmr.msra.gmra.mxu0 %vm702_vm3, %v1608_v42 }
 0xe07   : > { %2885 = vmatprep.mubr.msk.bf16.mxu0 %vm3345_vm0, %v3344_v0  ;;  %2876 = vmatpush3.bf16.msra.mxu1 %v3026_v45 }
 0xe08   : > { %2889 = vmatprep.subr.bf16.mxu1 %v3344_v0  ;;  %2882 = vmatpush3.bf16.msra.mxu0 %v3027_v44 }
 0xe09   : > { %2883 = vmatprep.subr.bf16.mxu0 %v3344_v0 }
 0xeba   : > { %v1961_v50 = vpop.f32.mrf.mxu1 }
 0xebb   : > { %2105 = vxpose.xlu1.b32.start [1/4] (short) (narrow) %v1961_v50, 8 }
 0xebc   : > { %v2853_v8 = vpop.f32.mrf.mxu1 }
 0xebe   : > { %v1964_v9 = vpop.f32.mrf.mxu1  ;;  %v2007_v10 = vpop.f32.mrf.mxu0 }
 0xebf   : > { %2106 = vxpose.xlu1.b32.cont [2/4] (short) (narrow) %v2007_v10, 8 }
 0xec0   : > { %v2854_v11 = vpop.f32.mrf.mxu1  ;;  %v2859_v12 = vpop.f32.mrf.mxu0 }
 0xec2   : > { %v2010_v13 = vpop.f32.mrf.mxu0  ;;  %v2053_v15 = vpop.f32.mrf.mxu1 }
 0xec3   : > { %2107 = vxpose.xlu1.b32.cont [3/4] (short) (narrow) %v2053_v15, 8 }
 0xec4   : > { %v2860_v16 = vpop.f32.mrf.mxu0  ;;  %v2865_v17 = vpop.f32.mrf.mxu1 }
 0xec5   : > { %v2667_v16 = vld [vmem:[%s3943_s12 + $0x1] ss:$0 sm:$0xff] }
 0xec6   : > { %v2056_v18 = vpop.f32.mrf.mxu1  ;;  %v2099_v19 = vpop.f32.mrf.mxu0 }
 0xec7   : > { %2108 = vxpose.xlu1.b32.end [4/4] (short) (narrow) %v2099_v19, 8  ;;  %v2668_v18 = vld [vmem:[#allocation13 + $0x1] ss:$0 sm:$0xff] }
 0xec8   : > { %v2866_v20 = vpop.f32.mrf.mxu1  ;;  %v2871_v21 = vpop.f32.mrf.mxu0 }
 0xeca   : > { %v2102_v22 = vpop.f32.mrf.mxu0 }
 0xecc   : > { %v2872_v23 = vpop.f32.mrf.mxu0 }
 0xf37   : > { %v2121_v24 = vpop.trf.xlu1 }
 0xf38   : > { %v2137_v25 = vpack.c.bf16 %v2121_v24, %v2121_v24 }
 0xf3a   : > { %2878 = vmatmul.mubr.msk.bf16.vlgmr.msra.gmra.mxu1 %vm598_vm1, %v2137_v25 }
 0xf3b   : > { %2897 = vmatprep.mubr.msk.bf16.mxu1 %vm3345_vm0, %v3344_v0  ;;  %2890 = vmatpush3.bf16.msra.mxu1 %v3029_v46 }
 0xf3c   : > { %2891 = vmatprep.subr.bf16.mxu1 %v3344_v0 }
 0xf3f   : > { %2892 = vmatpush3.bf16.msra.mxu1 %v3030_v47 }
 0xf40   : > { %2893 = vmatprep.subr.bf16.mxu1 %v3344_v0 }
 0xf43   : > { %2894 = vmatpush3.bf16.msra.mxu1 %v3031_v59 }
 0xf44   : > { %2895 = vmatprep.subr.bf16.mxu1 %v3344_v0 }
 0xf47   : > { %2896 = vmatpush3.bf16.msra.mxu1 %v3032_v29 }
 0xffa   : > { %v2200_v27 = vpop.f32.mrf.mxu1 }
 0xffb   : > { %v2201_v28 = vadd.f32 %v2637_v26, %v2200_v27 }
 0xffc   : > { %v2879_v33 = vpop.f32.mrf.mxu1 }
 0xffd   : > { %v2206_v34 = vadd.f32 %v2201_v28, %v3776_v14  ;;  %v3028_v14 = vld [vmem:[%s3939_s8 + $0x10] sm:$0xff]  }
 0xffe   : > { %v2203_v5 = vpop.f32.mrf.mxu1  ;;  %2884 = vmatpush3.bf16.msra.mxu0 %v3028_v14 }
 0xfff   : > { %v2207_v35 = vsel %vm598_vm1, %v2206_v34, 0.0 }
0x1000   : > { %2208 = vadd.xlane.f32.xlu0 %v2207_v35  ;;  %v2880_v36 = vpop.f32.mrf.mxu1 }
0x1089   : > { %v2209_v37 = vpop.xlane.xlu0 %2208 }
0x108a   : > { %v2210_v38 = vmul.f32 0.03125, %v2209_v37 }
0x108c   : > { %v2211_v39 = vsub.f32 %v2206_v34, %v2210_v38 }
0x108e   : > { %v2212_v40 = vmul.f32 %v2211_v39, %v2211_v39 }
0x1090   : > { %v2213_v43 = vsel %vm598_vm1, %v2212_v40, 0.0 }
0x1091   : > { %2214 = vadd.xlane.f32.xlu0 %v2213_v43 }
0x111a   : > { %v2215_v48 = vpop.xlane.xlu0 %2214 }
0x111b   : > { %v2216_v49 = vmul.f32 0.03125, %v2215_v48 }
0x111d   : > { %v2217_v51 = vadd.f32 1e-05, %v2216_v49 }
0x111f   : > { %3069 = vrsqrt.f32 %v2217_v51 }
0x112c   : > { %v3070_v52 = vpop.eup %3069 }
0x112d   : > { %v2219_v54 = vmul.f32 %v3070_v52, %v2211_v39 }
0x112f   : > { %v2228_v56 = vmul.f32 %v2641_v53, %v2219_v54 }
0x1131   : > { %v2237_v57 = vadd.f32 %v2642_v55, %v2228_v56 }
0x1133   : > { %v2238_v58 = vpack.c.bf16 %v2237_v57, %v2237_v57 }
0x1135   : > { %2886 = vmatmul.mubr.msk.bf16.vlgmr.msra.gmra.mxu0 %vm598_vm1, %v2238_v58 }
0x11f5   : > { %v2301_v30 = vpop.f32.mrf.mxu0 }
0x11f6   : > { %v2302_v61 = vadd.f32 %v2647_v60, %v2301_v30 }
0x11f7   : > { %v2887_v31 = vpop.f32.mrf.mxu0 }
0x11f8   : > { %v2307_v32 = vmax.f32 %v2302_v61, 0.0 }
0x11f9   : > { %v2304_v62 = vpop.f32.mrf.mxu0 }
0x11fa   : > { %v2308_v63 = vpack.c.bf16 %v2307_v32, %v2307_v32 }
0x11fb   : > { %v2888_v1 = vpop.f32.mrf.mxu0 }
0x11fc   : > { %2898 = vmatmul.mubr.msk.bf16.vlgmr.msra.gmra.mxu1 %vm1422_vm4, %v2308_v63 }
0x12bc   : > { %v2387_v0 = vpop.f32.mrf.mxu1 }
0x12bd   : > { %v2388_v3 = vadd.f32 %v2660_v2, %v2387_v0 }
0x12be   : > { %v2899_v4 = vpop.f32.mrf.mxu1 }
0x12bf   : > { %v2393_v41 = vadd.f32 %v2388_v3, %v2237_v57 }
0x12c0   : > { %v2390_v6 = vpop.f32.mrf.mxu1 }
0x12c1   : > { %v2394_v42 = vsel %vm598_vm1, %v2393_v41, 0.0 }
0x12c2   : > { %2395 = vadd.xlane.f32.xlu0 %v2394_v42  ;;  %v2900_v7 = vpop.f32.mrf.mxu1 }
0x134b   : > { %v2396_v45 = vpop.xlane.xlu0 %2395 }
0x134c   : > { %v2397_v50 = vmul.f32 0.03125, %v2396_v45 }
0x134e   : > { %v2398_v8 = vsub.f32 %v2393_v41, %v2397_v50 }
0x1350   : > { %v2399_v9 = vmul.f32 %v2398_v8, %v2398_v8 }
0x1352   : > { %v2400_v10 = vsel %vm598_vm1, %v2399_v9, 0.0 }
0x1353   : > { %2401 = vadd.xlane.f32.xlu0 %v2400_v10 }
0x13dc   : > { %v2402_v11 = vpop.xlane.xlu0 %2401 }
0x13dd   : > { %v2403_v12 = vmul.f32 0.03125, %v2402_v11 }
0x13df   : > { %v2404_v13 = vadd.f32 1e-05, %v2403_v12 }
0x13e1   : > { %3071 = vrsqrt.f32 %v2404_v13 }
0x13ee   : > { %v3072_v15 = vpop.eup %3071 }
0x13ef   : > { %v2406_v17 = vmul.f32 %v3072_v15, %v2398_v8 }
0x13f1   : > { %v2415_v19 = vmul.f32 %v2667_v16, %v2406_v17 }
0x13f3   : > { %v2424_v20 = vadd.f32 %v2668_v18, %v2415_v19 }
0x13f5   : > { %2425 = vst.msk [vmem:[%s569_s23] sm:$0xff] %vm598_vm1, %v2424_v20 }
0x13f6   : > { %3270 = shalt.err (!%p3267_p1)
}
0x13f7   : > { %s3271_s28 = scalar_lea.hbm %s2438_s6, 128  ;;  %s3275_s22 = scalar_lea.hbm %s3984_s5, 256 }
0x13f8   : > { %p3272_p3 = scmp.ne.s32.totalorder %s2438_s6, %s3271_s28  ;;  %p3276_p12 = scmp.lt.s32.totalorder %s2438_s6, %s3984_s5 }
0x13f9   : > { %p3277_p0 = scmp.lt.s32.totalorder %s3275_s22, %s3271_s28 }
0x13fa   : > { %p3273_p4 = pnand %p3272_p3, %p3985_p10 }
0x13fb   : > { %p3278_p7 = por %p3277_p0, %p3276_p12 }
0x13fc   : > { %p3274_p6 = pneg %p3273_p4 }
0x13fe   : > { %p3279_p2 = pnand %p3278_p7, %p3274_p6 }
0x1400   : > { %3282 = shalt.err (!%p3279_p2)
}
0x1401   : > { %2927 = dma.vmem_to_hbm [thread:$0]  (%p3985_p10), %s2441_s27, 128, %s2438_s6, %s2427_s7  }
0x1402 PF: > { %s2452_s17 = sand.u32 1, %s3321_s29   ;;  %p3986_p8 = scmp.ne.s32.totalorder %s3973_s25, 0 }
0x1403   : > { %p3987_p11 = scmp.ge.s32.totalorder %s3333_s16, 2  ;;  %s2453_s21 = scalar_lea.sflag [#allocation4], %s2452_s17 }
0x1405   : > { %p2953_p13 = pnand %p3987_p11, %p3986_p8 }
0x1407   : > { %p2954_p5 = pneg %p2953_p13 }
0x1409   : > { %3316 = dma.done.wait (%p2954_p5), %s2453_s21, 128  }
0x140a   : > { %3318 = vsyncadd (%p2954_p5), %s2453_s21, 4294967168  ;;  %s3988_s15 = sld [smem:[#allocation20_spill]]  ;;  %p30_p9 = scmp.ge.s32.totalorder %s3543_s26, 4  }
0x140b   : > { %s3989_s9 = sld [smem:[#allocation21_spill]]  ;;  %s3990_s29 = smov %s3325_s30 }
0x140c   : > { %s3993_s16 = smov %s3543_s26 }
0x140d   :  { %32 = sbr.rel (!%p30_p9) target bundleno = 16 (0x10), region = 157 }
0x1410   : > { %s3991_s30 = smov %s3988_s15 }
0x1411   : > { %s3992_s15 = smov %s3989_s9 }
0x1412   :  { %2458 = vsyncpa [#allocation3], 1 }
0x1413   :  { %2460 = vsyncpa [#allocation3 + $0x1], 1 }
0x1414   :  { %2461 = vsyncpa [#allocation6], 1 }
0x1415   :  { %2462 = vsyncpa [#allocation9], 1 }
0x1416   :  { %2463 = vsyncpa [#allocation12], 1 }
0x1417   :  { %2464 = vsyncpa [#allocation4], 1 }
0x1418   :  { %2466 = vsyncpa [#allocation4 + $0x1], 1 }

</bundles_post_ra>
